<compile_context>
chip_gen: v5e
topology: v5e:2x2
jax: 0.10.0
libtpu: 0.0.40
codegen_flags: <defaults>
</compile_context>

<pallas_src>
import functools

import numpy as np
import jax
import jax.numpy as jnp
from jax.experimental import pallas as pl
from jax.experimental.pallas import tpu as pltpu


# --------------------- bilinear interpolation matrices -----------------------

def _bilinear2x_matrix(n):
    """(2n, n) float64 matrix of PyTorch bilinear x2 upsample (align_corners=False)."""
    u = np.zeros((2 * n, n), dtype=np.float64)
    for o in range(2 * n):
        src = (o + 0.5) * 0.5 - 0.5
        if src < 0.0:
            src = 0.0
        i0 = min(int(np.floor(src)), n - 1)
        i1 = min(i0 + 1, n - 1)
        frac = src - i0
        u[o, i0] += 1.0 - frac
        u[o, i1] += frac
    return u


def _bilinear4x_matrices(h, w, cout):
    """Fused x4 matrices (float64): U4h (4H, H), U4wT (W, 4W), block-diag U4wT."""
    u4h = _bilinear2x_matrix(2 * h) @ _bilinear2x_matrix(h)           # (4H, H)
    u4wt = (_bilinear2x_matrix(2 * w) @ _bilinear2x_matrix(w)).T      # (W, 4W)
    u4wt_blk = np.zeros((cout * w, cout * 4 * w), dtype=np.float64)
    for co in range(cout):
        u4wt_blk[co * w:(co + 1) * w, co * 4 * w:(co + 1) * 4 * w] = u4wt
    return u4h, u4wt, u4wt_blk


# ------------------------------ fused kernel ---------------------------------

def _offset_net_kernel(x_ref, w_ref, b_ref, u4h_ref, u4wt_ref, up_ref, cls_ref):
    # x_ref:    (B, Cin, H+2, W+2)  zero-padded input images            (VMEM)
    # w_ref:    (Cout*Cin*9,)       conv weights, PyTorch row-major     (SMEM)
    # b_ref:    (Cout,)             conv bias                           (SMEM)
    # u4h_ref:  (4H, H)             fused x4 row-interp matrix          (VMEM)
    # u4wt_ref: (Cout*W, Cout*4W)   block-diag fused x4 col-interp^T    (VMEM)
    # up_ref:   (B, 4H, Cout*4W)    4x upsample, channel-in-lanes       (VMEM)
    # cls_ref:  (B, Cout, H, W)     conv output ("classfeature")        (VMEM)
    bb, cout, h, w = cls_ref.shape
    cin = x_ref.shape[1]

    for b in range(bb):                                   # static unroll (B small)
        # ---- conv 3x3, stride 1, pad 1: unrolled SMEM-scalar x tile VPU FMAs ----
        accs = [jnp.full((h, w), b_ref[co], dtype=jnp.float32) for co in range(cout)]
        for ci in range(cin):
            for ky in range(3):
                for kx in range(3):
                    tap = x_ref[b, ci, ky:ky + h, kx:kx + w]       # (H, W) tap
                    for co in range(cout):
                        k = ((co * cin + ci) * 3 + ky) * 3 + kx
                        accs[co] = accs[co] + w_ref[k] * tap

        # ---- classfeature (small, direct NCHW store) ----
        for co in range(cout):
            cls_ref[b, co] = accs[co].astype(cls_ref.dtype)

        # ---- fused 4x bilinear upsample: 2 MXU matmuls, channels stacked in lanes ----
        y_st = jnp.concatenate(accs, axis=1)                        # (H, Cout*W)
        t = jnp.dot(u4h_ref[...], y_st,
                    preferred_element_type=jnp.float32)             # (4H, Cout*W)
        up_st = jnp.dot(t, u4wt_ref[...],
                        preferred_element_type=jnp.float32)         # (4H, Cout*4W)
        up_ref[b] = up_st.astype(up_ref.dtype)                      # 128-lane dense store


# ------------------------------ model wrapper --------------------------------

def init_params(key, inchannel, outchannel=2):
    """Deterministic synthetic params, PyTorch conv layout (Cout, Cin, 3, 3)."""
    kw, kb = jax.random.split(key)
    bound = 1.0 / float(np.sqrt(inchannel * 9.0))      # PyTorch fan_in scaling
    w = jax.random.uniform(kw, (outchannel, inchannel, 3, 3), jnp.float32,
                           -bound, bound)
    b = jax.random.uniform(kb, (outchannel,), jnp.float32, -bound, bound)
    return {"w": w, "b": b}


def _pick_batch_block(n, desired=8):
    """Largest divisor of n that is <= desired, capped so the grid keeps >= 2
    steps whenever n >= 2 (keeps the batch axis splittable across v7x's 2 TCs)."""
    cap = min(desired, n if n < 2 else max(1, n // 2))
    for cand in range(cap, 0, -1):
        if n % cand == 0:
            return cand
    return 1


def offset_net_forward(params, x_nchw, *, batch_block=8):
    """OffsetNet forward. x_nchw: (N, Cin, H, W) -> (upsampled_4x, classfeature), NCHW."""
    x = x_nchw.astype(jnp.float32)
    n, cin, h, w = x.shape
    cout = params["w"].shape[0]
    bb = _pick_batch_block(n, batch_block)

    # glue: zero-pad once; the kernel takes all 9 conv taps as static VMEM slices.
    xp = jnp.pad(x, ((0, 0), (0, 0), (1, 1), (1, 1)))            # (N, Cin, H+2, W+2)
    w_flat = params["w"].astype(jnp.float32).reshape(-1)         # (Cout*Cin*9,)
    bias = params["b"].astype(jnp.float32)                       # (Cout,)

    # glue: fused x4 interpolation matrices (trace-time float64 -> f32 constants).
    u4h_np, _, u4wt_blk_np = _bilinear4x_matrices(h, w, cout)
    u4h = jnp.asarray(u4h_np, dtype=jnp.float32)                 # (4H, H)
    u4wt = jnp.asarray(u4wt_blk_np, dtype=jnp.float32)           # (Cout*W, Cout*4W)

    up_st, cls = pl.pallas_call(
        _offset_net_kernel,
        out_shape=(
            jax.ShapeDtypeStruct((n, 4 * h, cout * 4 * w), jnp.float32),  # stacked
            jax.ShapeDtypeStruct((n, cout, h, w), jnp.float32),
        ),
        grid_spec=pltpu.PrefetchScalarGridSpec(
            num_scalar_prefetch=0,
            grid=(n // bb,),
            in_specs=[
                pl.BlockSpec((bb, cin, h + 2, w + 2), lambda i: (i, 0, 0, 0)),
                pl.BlockSpec(memory_space=pltpu.MemorySpace.SMEM),   # conv weights
                pl.BlockSpec(memory_space=pltpu.MemorySpace.SMEM),   # conv bias
                pl.BlockSpec((4 * h, h), lambda i: (0, 0)),          # U4h
                pl.BlockSpec((cout * w, cout * 4 * w), lambda i: (0, 0)),  # U4wT blk
            ],
            out_specs=(
                pl.BlockSpec((bb, 4 * h, cout * 4 * w), lambda i: (i, 0, 0)),
                pl.BlockSpec((bb, cout, h, w), lambda i: (i, 0, 0, 0)),
            ),
        ),
        compiler_params=pltpu.CompilerParams(
            dimension_semantics=("parallel",),
            vmem_limit_bytes=32 * 1024 * 1024,
        ),
    )(xp, w_flat, bias, u4h, u4wt)

    # undo the channel-in-lanes layout (cheap layout plumbing in the wrapper).
    up = jnp.transpose(up_st.reshape(n, 4 * h, cout, 4 * w), (0, 2, 1, 3))
    return up, cls


# ------------------------------ numpy reference ------------------------------

def _reference_forward(w, b, x, u4h, u4wt):
    """float64 numpy reference (conv + fused x4 bilinear) for the self-check."""
    w = np.asarray(w, np.float64)
    b = np.asarray(b, np.float64)
    x = np.asarray(x, np.float64)
    n, cin, h, wd = x.shape
    cout = w.shape[0]
    xp = np.pad(x, ((0, 0), (0, 0), (1, 1), (1, 1)))
    y = np.zeros((n, cout, h, wd), np.float64)
    for co in range(cout):
        y[:, co] = b[co]
        for ci in range(cin):
            for ky in range(3):
                for kx in range(3):
                    y[:, co] += w[co, ci, ky, kx] * xp[:, ci, ky:ky + h, kx:kx + wd]
    up = np.einsum('ai,ncij,jd->ncad', u4h, y, u4wt)
    return up, y


if __name__ == "__main__":
    key = jax.random.PRNGKey(0)
    kx, kp = jax.random.split(key)

    inchannel = 4
    x = jax.random.normal(kx, (2, inchannel, 16, 16), jnp.float32)   # NCHW
    params = init_params(kp, inchannel)

    fwd = jax.jit(functools.partial(offset_net_forward, params))
    up, cls = fwd(x)
    jax.block_until_ready((up, cls))

    assert up.shape == (2, 2, 64, 64), up.shape
    assert cls.shape == (2, 2, 16, 16), cls.shape
    assert up.dtype == jnp.float32 and cls.dtype == jnp.float32
    assert bool(jnp.all(jnp.isfinite(up))) and bool(jnp.all(jnp.isfinite(cls)))

    # self-check vs float64 reference (loose tol: MXU f32 matmuls may use
    # reduced-precision passes on TPU).
    u4h_np, u4wt_np, _ = _bilinear4x_matrices(16, 16, 2)
    up_ref, cls_ref = _reference_forward(params["w"], params["b"], x, u4h_np, u4wt_np)
    assert float(np.max(np.abs(np.asarray(cls) - cls_ref))) < 1e-3
    assert float(np.max(np.abs(np.asarray(up) - up_ref))) < 5e-2
    print("KERNEL_OK")
</pallas_src>

<mosaic_0001>
module attributes {stable_mosaic.version = 11 : i64} {
  func.func @_offset_net_kernel(%arg0: i32, %arg1: memref<1x4x18x18xf32, #tpu.memory_space<vmem>>, %arg2: memref<72xf32, #tpu.memory_space<smem>>, %arg3: memref<2xf32, #tpu.memory_space<smem>>, %arg4: memref<64x16xf32, #tpu.memory_space<vmem>>, %arg5: memref<32x128xf32, #tpu.memory_space<vmem>>, %arg6: memref<1x64x128xf32, #tpu.memory_space<vmem>>, %arg7: memref<1x2x16x16xf32, #tpu.memory_space<vmem>>) attributes {dimension_semantics = [#tpu.dimension_semantics<parallel>], iteration_bounds = array<i64: 2>, scalar_prefetch = 0 : i64, scratch_operands = 0 : i64, tpu.core_type = #tpu.core_type<tc>, window_params = [{transform_indices = @transform_0, window_bounds = array<i64: 1, 4, 18, 18>}, {transform_indices = @transform_1, window_bounds = array<i64: 72>}, {transform_indices = @transform_2, window_bounds = array<i64: 2>}, {pipeline_mode = #tpu.pipeline_mode<synchronous>, transform_indices = @transform_3, window_bounds = array<i64: 64, 16>}, {pipeline_mode = #tpu.pipeline_mode<synchronous>, transform_indices = @transform_4, window_bounds = array<i64: 32, 128>}, {transform_indices = @transform_5, window_bounds = array<i64: 1, 64, 128>}, {transform_indices = @transform_6, window_bounds = array<i64: 1, 2, 16, 16>}]} {
    %c0 = arith.constant 0 : index
    %0 = memref.load %arg3[%c0] : memref<2xf32, #tpu.memory_space<smem>>
    %1 = vector.broadcast %0 : f32 to vector<16x16xf32>
    %c1 = arith.constant 1 : index
    %2 = memref.load %arg3[%c1] : memref<2xf32, #tpu.memory_space<smem>>
    %3 = vector.broadcast %2 : f32 to vector<16x16xf32>
    %c0_0 = arith.constant 0 : index
    %c0_1 = arith.constant 0 : index
    %c0_2 = arith.constant 0 : index
    %c0_3 = arith.constant 0 : index
    %4 = vector.load %arg1[%c0_0, %c0_1, %c0_2, %c0_3] : memref<1x4x18x18xf32, #tpu.memory_space<vmem>>, vector<1x1x16x16xf32>
    %5 = vector.shape_cast %4 : vector<1x1x16x16xf32> to vector<16x16xf32>
    %c0_4 = arith.constant 0 : index
    %6 = memref.load %arg2[%c0_4] : memref<72xf32, #tpu.memory_space<smem>>
    %7 = vector.broadcast %6 : f32 to vector<16x16xf32>
    %8 = arith.mulf %7, %5 : vector<16x16xf32>
    %9 = arith.addf %1, %8 : vector<16x16xf32>
    %c36 = arith.constant 36 : index
    %10 = memref.load %arg2[%c36] : memref<72xf32, #tpu.memory_space<smem>>
    %11 = vector.broadcast %10 : f32 to vector<16x16xf32>
    %12 = arith.mulf %11, %5 : vector<16x16xf32>
    %13 = arith.addf %3, %12 : vector<16x16xf32>
    %c0_5 = arith.constant 0 : index
    %c0_6 = arith.constant 0 : index
    %c0_7 = arith.constant 0 : index
    %c1_8 = arith.constant 1 : index
    %14 = vector.load %arg1[%c0_5, %c0_6, %c0_7, %c1_8] : memref<1x4x18x18xf32, #tpu.memory_space<vmem>>, vector<1x1x16x16xf32>
    %15 = vector.shape_cast %14 : vector<1x1x16x16xf32> to vector<16x16xf32>
    %c1_9 = arith.constant 1 : index
    %16 = memref.load %arg2[%c1_9] : memref<72xf32, #tpu.memory_space<smem>>
    %17 = vector.broadcast %16 : f32 to vector<16x16xf32>
    %18 = arith.mulf %17, %15 : vector<16x16xf32>
    %19 = arith.addf %9, %18 : vector<16x16xf32>
    %c37 = arith.constant 37 : index
    %20 = memref.load %arg2[%c37] : memref<72xf32, #tpu.memory_space<smem>>
    %21 = vector.broadcast %20 : f32 to vector<16x16xf32>
    %22 = arith.mulf %21, %15 : vector<16x16xf32>
    %23 = arith.addf %13, %22 : vector<16x16xf32>
    %c0_10 = arith.constant 0 : index
    %c0_11 = arith.constant 0 : index
    %c0_12 = arith.constant 0 : index
    %c2 = arith.constant 2 : index
    %24 = vector.load %arg1[%c0_10, %c0_11, %c0_12, %c2] : memref<1x4x18x18xf32, #tpu.memory_space<vmem>>, vector<1x1x16x16xf32>
    %25 = vector.shape_cast %24 : vector<1x1x16x16xf32> to vector<16x16xf32>
    %c2_13 = arith.constant 2 : index
    %26 = memref.load %arg2[%c2_13] : memref<72xf32, #tpu.memory_space<smem>>
    %27 = vector.broadcast %26 : f32 to vector<16x16xf32>
    %28 = arith.mulf %27, %25 : vector<16x16xf32>
    %29 = arith.addf %19, %28 : vector<16x16xf32>
    %c38 = arith.constant 38 : index
    %30 = memref.load %arg2[%c38] : memref<72xf32, #tpu.memory_space<smem>>
    %31 = vector.broadcast %30 : f32 to vector<16x16xf32>
    %32 = arith.mulf %31, %25 : vector<16x16xf32>
    %33 = arith.addf %23, %32 : vector<16x16xf32>
    %c0_14 = arith.constant 0 : index
    %c0_15 = arith.constant 0 : index
    %c1_16 = arith.constant 1 : index
    %c0_17 = arith.constant 0 : index
    %34 = vector.load %arg1[%c0_14, %c0_15, %c1_16, %c0_17] : memref<1x4x18x18xf32, #tpu.memory_space<vmem>>, vector<1x1x16x16xf32>
    %35 = vector.shape_cast %34 : vector<1x1x16x16xf32> to vector<16x16xf32>
    %c3 = arith.constant 3 : index
    %36 = memref.load %arg2[%c3] : memref<72xf32, #tpu.memory_space<smem>>
    %37 = vector.broadcast %36 : f32 to vector<16x16xf32>
    %38 = arith.mulf %37, %35 : vector<16x16xf32>
    %39 = arith.addf %29, %38 : vector<16x16xf32>
    %c39 = arith.constant 39 : index
    %40 = memref.load %arg2[%c39] : memref<72xf32, #tpu.memory_space<smem>>
    %41 = vector.broadcast %40 : f32 to vector<16x16xf32>
    %42 = arith.mulf %41, %35 : vector<16x16xf32>
    %43 = arith.addf %33, %42 : vector<16x16xf32>
    %c0_18 = arith.constant 0 : index
    %c0_19 = arith.constant 0 : index
    %c1_20 = arith.constant 1 : index
    %c1_21 = arith.constant 1 : index
    %44 = vector.load %arg1[%c0_18, %c0_19, %c1_20, %c1_21] : memref<1x4x18x18xf32, #tpu.memory_space<vmem>>, vector<1x1x16x16xf32>
    %45 = vector.shape_cast %44 : vector<1x1x16x16xf32> to vector<16x16xf32>
    %c4 = arith.constant 4 : index
    %46 = memref.load %arg2[%c4] : memref<72xf32, #tpu.memory_space<smem>>
    %47 = vector.broadcast %46 : f32 to vector<16x16xf32>
    %48 = arith.mulf %47, %45 : vector<16x16xf32>
    %49 = arith.addf %39, %48 : vector<16x16xf32>
    %c40 = arith.constant 40 : index
    %50 = memref.load %arg2[%c40] : memref<72xf32, #tpu.memory_space<smem>>
    %51 = vector.broadcast %50 : f32 to vector<16x16xf32>
    %52 = arith.mulf %51, %45 : vector<16x16xf32>
    %53 = arith.addf %43, %52 : vector<16x16xf32>
    %c0_22 = arith.constant 0 : index
    %c0_23 = arith.constant 0 : index
    %c1_24 = arith.constant 1 : index
    %c2_25 = arith.constant 2 : index
    %54 = vector.load %arg1[%c0_22, %c0_23, %c1_24, %c2_25] : memref<1x4x18x18xf32, #tpu.memory_space<vmem>>, vector<1x1x16x16xf32>
    %55 = vector.shape_cast %54 : vector<1x1x16x16xf32> to vector<16x16xf32>
    %c5 = arith.constant 5 : index
    %56 = memref.load %arg2[%c5] : memref<72xf32, #tpu.memory_space<smem>>
    %57 = vector.broadcast %56 : f32 to vector<16x16xf32>
    %58 = arith.mulf %57, %55 : vector<16x16xf32>
    %59 = arith.addf %49, %58 : vector<16x16xf32>
    %c41 = arith.constant 41 : index
    %60 = memref.load %arg2[%c41] : memref<72xf32, #tpu.memory_space<smem>>
    %61 = vector.broadcast %60 : f32 to vector<16x16xf32>
    %62 = arith.mulf %61, %55 : vector<16x16xf32>
    %63 = arith.addf %53, %62 : vector<16x16xf32>
    %c0_26 = arith.constant 0 : index
    %c0_27 = arith.constant 0 : index
    %c2_28 = arith.constant 2 : index
    %c0_29 = arith.constant 0 : index
    %64 = vector.load %arg1[%c0_26, %c0_27, %c2_28, %c0_29] : memref<1x4x18x18xf32, #tpu.memory_space<vmem>>, vector<1x1x16x16xf32>
    %65 = vector.shape_cast %64 : vector<1x1x16x16xf32> to vector<16x16xf32>
    %c6 = arith.constant 6 : index
    %66 = memref.load %arg2[%c6] : memref<72xf32, #tpu.memory_space<smem>>
    %67 = vector.broadcast %66 : f32 to vector<16x16xf32>
    %68 = arith.mulf %67, %65 : vector<16x16xf32>
    %69 = arith.addf %59, %68 : vector<16x16xf32>
    %c42 = arith.constant 42 : index
    %70 = memref.load %arg2[%c42] : memref<72xf32, #tpu.memory_space<smem>>
    %71 = vector.broadcast %70 : f32 to vector<16x16xf32>
    %72 = arith.mulf %71, %65 : vector<16x16xf32>
    %73 = arith.addf %63, %72 : vector<16x16xf32>
    %c0_30 = arith.constant 0 : index
    %c0_31 = arith.constant 0 : index
    %c2_32 = arith.constant 2 : index
    %c1_33 = arith.constant 1 : index
    %74 = vector.load %arg1[%c0_30, %c0_31, %c2_32, %c1_33] : memref<1x4x18x18xf32, #tpu.memory_space<vmem>>, vector<1x1x16x16xf32>
    %75 = vector.shape_cast %74 : vector<1x1x16x16xf32> to vector<16x16xf32>
    %c7 = arith.constant 7 : index
    %76 = memref.load %arg2[%c7] : memref<72xf32, #tpu.memory_space<smem>>
    %77 = vector.broadcast %76 : f32 to vector<16x16xf32>
    %78 = arith.mulf %77, %75 : vector<16x16xf32>
    %79 = arith.addf %69, %78 : vector<16x16xf32>
    %c43 = arith.constant 43 : index
    %80 = memref.load %arg2[%c43] : memref<72xf32, #tpu.memory_space<smem>>
    %81 = vector.broadcast %80 : f32 to vector<16x16xf32>
    %82 = arith.mulf %81, %75 : vector<16x16xf32>
    %83 = arith.addf %73, %82 : vector<16x16xf32>
    %c0_34 = arith.constant 0 : index
    %c0_35 = arith.constant 0 : index
    %c2_36 = arith.constant 2 : index
    %c2_37 = arith.constant 2 : index
    %84 = vector.load %arg1[%c0_34, %c0_35, %c2_36, %c2_37] : memref<1x4x18x18xf32, #tpu.memory_space<vmem>>, vector<1x1x16x16xf32>
    %85 = vector.shape_cast %84 : vector<1x1x16x16xf32> to vector<16x16xf32>
    %c8 = arith.constant 8 : index
    %86 = memref.load %arg2[%c8] : memref<72xf32, #tpu.memory_space<smem>>
    %87 = vector.broadcast %86 : f32 to vector<16x16xf32>
    %88 = arith.mulf %87, %85 : vector<16x16xf32>
    %89 = arith.addf %79, %88 : vector<16x16xf32>
    %c44 = arith.constant 44 : index
    %90 = memref.load %arg2[%c44] : memref<72xf32, #tpu.memory_space<smem>>
    %91 = vector.broadcast %90 : f32 to vector<16x16xf32>
    %92 = arith.mulf %91, %85 : vector<16x16xf32>
    %93 = arith.addf %83, %92 : vector<16x16xf32>
    %c0_38 = arith.constant 0 : index
    %c1_39 = arith.constant 1 : index
    %c0_40 = arith.constant 0 : index
    %c0_41 = arith.constant 0 : index
    %94 = vector.load %arg1[%c0_38, %c1_39, %c0_40, %c0_41] : memref<1x4x18x18xf32, #tpu.memory_space<vmem>>, vector<1x1x16x16xf32>
    %95 = vector.shape_cast %94 : vector<1x1x16x16xf32> to vector<16x16xf32>
    %c9 = arith.constant 9 : index
    %96 = memref.load %arg2[%c9] : memref<72xf32, #tpu.memory_space<smem>>
    %97 = vector.broadcast %96 : f32 to vector<16x16xf32>
    %98 = arith.mulf %97, %95 : vector<16x16xf32>
    %99 = arith.addf %89, %98 : vector<16x16xf32>
    %c45 = arith.constant 45 : index
    %100 = memref.load %arg2[%c45] : memref<72xf32, #tpu.memory_space<smem>>
    %101 = vector.broadcast %100 : f32 to vector<16x16xf32>
    %102 = arith.mulf %101, %95 : vector<16x16xf32>
    %103 = arith.addf %93, %102 : vector<16x16xf32>
    %c0_42 = arith.constant 0 : index
    %c1_43 = arith.constant 1 : index
    %c0_44 = arith.constant 0 : index
    %c1_45 = arith.constant 1 : index
    %104 = vector.load %arg1[%c0_42, %c1_43, %c0_44, %c1_45] : memref<1x4x18x18xf32, #tpu.memory_space<vmem>>, vector<1x1x16x16xf32>
    %105 = vector.shape_cast %104 : vector<1x1x16x16xf32> to vector<16x16xf32>
    %c10 = arith.constant 10 : index
    %106 = memref.load %arg2[%c10] : memref<72xf32, #tpu.memory_space<smem>>
    %107 = vector.broadcast %106 : f32 to vector<16x16xf32>
    %108 = arith.mulf %107, %105 : vector<16x16xf32>
    %109 = arith.addf %99, %108 : vector<16x16xf32>
    %c46 = arith.constant 46 : index
    %110 = memref.load %arg2[%c46] : memref<72xf32, #tpu.memory_space<smem>>
    %111 = vector.broadcast %110 : f32 to vector<16x16xf32>
    %112 = arith.mulf %111, %105 : vector<16x16xf32>
    %113 = arith.addf %103, %112 : vector<16x16xf32>
    %c0_46 = arith.constant 0 : index
    %c1_47 = arith.constant 1 : index
    %c0_48 = arith.constant 0 : index
    %c2_49 = arith.constant 2 : index
    %114 = vector.load %arg1[%c0_46, %c1_47, %c0_48, %c2_49] : memref<1x4x18x18xf32, #tpu.memory_space<vmem>>, vector<1x1x16x16xf32>
    %115 = vector.shape_cast %114 : vector<1x1x16x16xf32> to vector<16x16xf32>
    %c11 = arith.constant 11 : index
    %116 = memref.load %arg2[%c11] : memref<72xf32, #tpu.memory_space<smem>>
    %117 = vector.broadcast %116 : f32 to vector<16x16xf32>
    %118 = arith.mulf %117, %115 : vector<16x16xf32>
    %119 = arith.addf %109, %118 : vector<16x16xf32>
    %c47 = arith.constant 47 : index
    %120 = memref.load %arg2[%c47] : memref<72xf32, #tpu.memory_space<smem>>
    %121 = vector.broadcast %120 : f32 to vector<16x16xf32>
    %122 = arith.mulf %121, %115 : vector<16x16xf32>
    %123 = arith.addf %113, %122 : vector<16x16xf32>
    %c0_50 = arith.constant 0 : index
    %c1_51 = arith.constant 1 : index
    %c1_52 = arith.constant 1 : index
    %c0_53 = arith.constant 0 : index
    %124 = vector.load %arg1[%c0_50, %c1_51, %c1_52, %c0_53] : memref<1x4x18x18xf32, #tpu.memory_space<vmem>>, vector<1x1x16x16xf32>
    %125 = vector.shape_cast %124 : vector<1x1x16x16xf32> to vector<16x16xf32>
    %c12 = arith.constant 12 : index
    %126 = memref.load %arg2[%c12] : memref<72xf32, #tpu.memory_space<smem>>
    %127 = vector.broadcast %126 : f32 to vector<16x16xf32>
    %128 = arith.mulf %127, %125 : vector<16x16xf32>
    %129 = arith.addf %119, %128 : vector<16x16xf32>
    %c48 = arith.constant 48 : index
    %130 = memref.load %arg2[%c48] : memref<72xf32, #tpu.memory_space<smem>>
    %131 = vector.broadcast %130 : f32 to vector<16x16xf32>
    %132 = arith.mulf %131, %125 : vector<16x16xf32>
    %133 = arith.addf %123, %132 : vector<16x16xf32>
    %c0_54 = arith.constant 0 : index
    %c1_55 = arith.constant 1 : index
    %c1_56 = arith.constant 1 : index
    %c1_57 = arith.constant 1 : index
    %134 = vector.load %arg1[%c0_54, %c1_55, %c1_56, %c1_57] : memref<1x4x18x18xf32, #tpu.memory_space<vmem>>, vector<1x1x16x16xf32>
    %135 = vector.shape_cast %134 : vector<1x1x16x16xf32> to vector<16x16xf32>
    %c13 = arith.constant 13 : index
    %136 = memref.load %arg2[%c13] : memref<72xf32, #tpu.memory_space<smem>>
    %137 = vector.broadcast %136 : f32 to vector<16x16xf32>
    %138 = arith.mulf %137, %135 : vector<16x16xf32>
    %139 = arith.addf %129, %138 : vector<16x16xf32>
    %c49 = arith.constant 49 : index
    %140 = memref.load %arg2[%c49] : memref<72xf32, #tpu.memory_space<smem>>
    %141 = vector.broadcast %140 : f32 to vector<16x16xf32>
    %142 = arith.mulf %141, %135 : vector<16x16xf32>
    %143 = arith.addf %133, %142 : vector<16x16xf32>
    %c0_58 = arith.constant 0 : index
    %c1_59 = arith.constant 1 : index
    %c1_60 = arith.constant 1 : index
    %c2_61 = arith.constant 2 : index
    %144 = vector.load %arg1[%c0_58, %c1_59, %c1_60, %c2_61] : memref<1x4x18x18xf32, #tpu.memory_space<vmem>>, vector<1x1x16x16xf32>
    %145 = vector.shape_cast %144 : vector<1x1x16x16xf32> to vector<16x16xf32>
    %c14 = arith.constant 14 : index
    %146 = memref.load %arg2[%c14] : memref<72xf32, #tpu.memory_space<smem>>
    %147 = vector.broadcast %146 : f32 to vector<16x16xf32>
    %148 = arith.mulf %147, %145 : vector<16x16xf32>
    %149 = arith.addf %139, %148 : vector<16x16xf32>
    %c50 = arith.constant 50 : index
    %150 = memref.load %arg2[%c50] : memref<72xf32, #tpu.memory_space<smem>>
    %151 = vector.broadcast %150 : f32 to vector<16x16xf32>
    %152 = arith.mulf %151, %145 : vector<16x16xf32>
    %153 = arith.addf %143, %152 : vector<16x16xf32>
    %c0_62 = arith.constant 0 : index
    %c1_63 = arith.constant 1 : index
    %c2_64 = arith.constant 2 : index
    %c0_65 = arith.constant 0 : index
    %154 = vector.load %arg1[%c0_62, %c1_63, %c2_64, %c0_65] : memref<1x4x18x18xf32, #tpu.memory_space<vmem>>, vector<1x1x16x16xf32>
    %155 = vector.shape_cast %154 : vector<1x1x16x16xf32> to vector<16x16xf32>
    %c15 = arith.constant 15 : index
    %156 = memref.load %arg2[%c15] : memref<72xf32, #tpu.memory_space<smem>>
    %157 = vector.broadcast %156 : f32 to vector<16x16xf32>
    %158 = arith.mulf %157, %155 : vector<16x16xf32>
    %159 = arith.addf %149, %158 : vector<16x16xf32>
    %c51 = arith.constant 51 : index
    %160 = memref.load %arg2[%c51] : memref<72xf32, #tpu.memory_space<smem>>
    %161 = vector.broadcast %160 : f32 to vector<16x16xf32>
    %162 = arith.mulf %161, %155 : vector<16x16xf32>
    %163 = arith.addf %153, %162 : vector<16x16xf32>
    %c0_66 = arith.constant 0 : index
    %c1_67 = arith.constant 1 : index
    %c2_68 = arith.constant 2 : index
    %c1_69 = arith.constant 1 : index
    %164 = vector.load %arg1[%c0_66, %c1_67, %c2_68, %c1_69] : memref<1x4x18x18xf32, #tpu.memory_space<vmem>>, vector<1x1x16x16xf32>
    %165 = vector.shape_cast %164 : vector<1x1x16x16xf32> to vector<16x16xf32>
    %c16 = arith.constant 16 : index
    %166 = memref.load %arg2[%c16] : memref<72xf32, #tpu.memory_space<smem>>
    %167 = vector.broadcast %166 : f32 to vector<16x16xf32>
    %168 = arith.mulf %167, %165 : vector<16x16xf32>
    %169 = arith.addf %159, %168 : vector<16x16xf32>
    %c52 = arith.constant 52 : index
    %170 = memref.load %arg2[%c52] : memref<72xf32, #tpu.memory_space<smem>>
    %171 = vector.broadcast %170 : f32 to vector<16x16xf32>
    %172 = arith.mulf %171, %165 : vector<16x16xf32>
    %173 = arith.addf %163, %172 : vector<16x16xf32>
    %c0_70 = arith.constant 0 : index
    %c1_71 = arith.constant 1 : index
    %c2_72 = arith.constant 2 : index
    %c2_73 = arith.constant 2 : index
    %174 = vector.load %arg1[%c0_70, %c1_71, %c2_72, %c2_73] : memref<1x4x18x18xf32, #tpu.memory_space<vmem>>, vector<1x1x16x16xf32>
    %175 = vector.shape_cast %174 : vector<1x1x16x16xf32> to vector<16x16xf32>
    %c17 = arith.constant 17 : index
    %176 = memref.load %arg2[%c17] : memref<72xf32, #tpu.memory_space<smem>>
    %177 = vector.broadcast %176 : f32 to vector<16x16xf32>
    %178 = arith.mulf %177, %175 : vector<16x16xf32>
    %179 = arith.addf %169, %178 : vector<16x16xf32>
    %c53 = arith.constant 53 : index
    %180 = memref.load %arg2[%c53] : memref<72xf32, #tpu.memory_space<smem>>
    %181 = vector.broadcast %180 : f32 to vector<16x16xf32>
    %182 = arith.mulf %181, %175 : vector<16x16xf32>
    %183 = arith.addf %173, %182 : vector<16x16xf32>
    %c0_74 = arith.constant 0 : index
    %c2_75 = arith.constant 2 : index
    %c0_76 = arith.constant 0 : index
    %c0_77 = arith.constant 0 : index
    %184 = vector.load %arg1[%c0_74, %c2_75, %c0_76, %c0_77] : memref<1x4x18x18xf32, #tpu.memory_space<vmem>>, vector<1x1x16x16xf32>
    %185 = vector.shape_cast %184 : vector<1x1x16x16xf32> to vector<16x16xf32>
    %c18 = arith.constant 18 : index
    %186 = memref.load %arg2[%c18] : memref<72xf32, #tpu.memory_space<smem>>
    %187 = vector.broadcast %186 : f32 to vector<16x16xf32>
    %188 = arith.mulf %187, %185 : vector<16x16xf32>
    %189 = arith.addf %179, %188 : vector<16x16xf32>
    %c54 = arith.constant 54 : index
    %190 = memref.load %arg2[%c54] : memref<72xf32, #tpu.memory_space<smem>>
    %191 = vector.broadcast %190 : f32 to vector<16x16xf32>
    %192 = arith.mulf %191, %185 : vector<16x16xf32>
    %193 = arith.addf %183, %192 : vector<16x16xf32>
    %c0_78 = arith.constant 0 : index
    %c2_79 = arith.constant 2 : index
    %c0_80 = arith.constant 0 : index
    %c1_81 = arith.constant 1 : index
    %194 = vector.load %arg1[%c0_78, %c2_79, %c0_80, %c1_81] : memref<1x4x18x18xf32, #tpu.memory_space<vmem>>, vector<1x1x16x16xf32>
    %195 = vector.shape_cast %194 : vector<1x1x16x16xf32> to vector<16x16xf32>
    %c19 = arith.constant 19 : index
    %196 = memref.load %arg2[%c19] : memref<72xf32, #tpu.memory_space<smem>>
    %197 = vector.broadcast %196 : f32 to vector<16x16xf32>
    %198 = arith.mulf %197, %195 : vector<16x16xf32>
    %199 = arith.addf %189, %198 : vector<16x16xf32>
    %c55 = arith.constant 55 : index
    %200 = memref.load %arg2[%c55] : memref<72xf32, #tpu.memory_space<smem>>
    %201 = vector.broadcast %200 : f32 to vector<16x16xf32>
    %202 = arith.mulf %201, %195 : vector<16x16xf32>
    %203 = arith.addf %193, %202 : vector<16x16xf32>
    %c0_82 = arith.constant 0 : index
    %c2_83 = arith.constant 2 : index
    %c0_84 = arith.constant 0 : index
    %c2_85 = arith.constant 2 : index
    %204 = vector.load %arg1[%c0_82, %c2_83, %c0_84, %c2_85] : memref<1x4x18x18xf32, #tpu.memory_space<vmem>>, vector<1x1x16x16xf32>
    %205 = vector.shape_cast %204 : vector<1x1x16x16xf32> to vector<16x16xf32>
    %c20 = arith.constant 20 : index
    %206 = memref.load %arg2[%c20] : memref<72xf32, #tpu.memory_space<smem>>
    %207 = vector.broadcast %206 : f32 to vector<16x16xf32>
    %208 = arith.mulf %207, %205 : vector<16x16xf32>
    %209 = arith.addf %199, %208 : vector<16x16xf32>
    %c56 = arith.constant 56 : index
    %210 = memref.load %arg2[%c56] : memref<72xf32, #tpu.memory_space<smem>>
    %211 = vector.broadcast %210 : f32 to vector<16x16xf32>
    %212 = arith.mulf %211, %205 : vector<16x16xf32>
    %213 = arith.addf %203, %212 : vector<16x16xf32>
    %c0_86 = arith.constant 0 : index
    %c2_87 = arith.constant 2 : index
    %c1_88 = arith.constant 1 : index
    %c0_89 = arith.constant 0 : index
    %214 = vector.load %arg1[%c0_86, %c2_87, %c1_88, %c0_89] : memref<1x4x18x18xf32, #tpu.memory_space<vmem>>, vector<1x1x16x16xf32>
    %215 = vector.shape_cast %214 : vector<1x1x16x16xf32> to vector<16x16xf32>
    %c21 = arith.constant 21 : index
    %216 = memref.load %arg2[%c21] : memref<72xf32, #tpu.memory_space<smem>>
    %217 = vector.broadcast %216 : f32 to vector<16x16xf32>
    %218 = arith.mulf %217, %215 : vector<16x16xf32>
    %219 = arith.addf %209, %218 : vector<16x16xf32>
    %c57 = arith.constant 57 : index
    %220 = memref.load %arg2[%c57] : memref<72xf32, #tpu.memory_space<smem>>
    %221 = vector.broadcast %220 : f32 to vector<16x16xf32>
    %222 = arith.mulf %221, %215 : vector<16x16xf32>
    %223 = arith.addf %213, %222 : vector<16x16xf32>
    %c0_90 = arith.constant 0 : index
    %c2_91 = arith.constant 2 : index
    %c1_92 = arith.constant 1 : index
    %c1_93 = arith.constant 1 : index
    %224 = vector.load %arg1[%c0_90, %c2_91, %c1_92, %c1_93] : memref<1x4x18x18xf32, #tpu.memory_space<vmem>>, vector<1x1x16x16xf32>
    %225 = vector.shape_cast %224 : vector<1x1x16x16xf32> to vector<16x16xf32>
    %c22 = arith.constant 22 : index
    %226 = memref.load %arg2[%c22] : memref<72xf32, #tpu.memory_space<smem>>
    %227 = vector.broadcast %226 : f32 to vector<16x16xf32>
    %228 = arith.mulf %227, %225 : vector<16x16xf32>
    %229 = arith.addf %219, %228 : vector<16x16xf32>
    %c58 = arith.constant 58 : index
    %230 = memref.load %arg2[%c58] : memref<72xf32, #tpu.memory_space<smem>>
    %231 = vector.broadcast %230 : f32 to vector<16x16xf32>
    %232 = arith.mulf %231, %225 : vector<16x16xf32>
    %233 = arith.addf %223, %232 : vector<16x16xf32>
    %c0_94 = arith.constant 0 : index
    %c2_95 = arith.constant 2 : index
    %c1_96 = arith.constant 1 : index
    %c2_97 = arith.constant 2 : index
    %234 = vector.load %arg1[%c0_94, %c2_95, %c1_96, %c2_97] : memref<1x4x18x18xf32, #tpu.memory_space<vmem>>, vector<1x1x16x16xf32>
    %235 = vector.shape_cast %234 : vector<1x1x16x16xf32> to vector<16x16xf32>
    %c23 = arith.constant 23 : index
    %236 = memref.load %arg2[%c23] : memref<72xf32, #tpu.memory_space<smem>>
    %237 = vector.broadcast %236 : f32 to vector<16x16xf32>
    %238 = arith.mulf %237, %235 : vector<16x16xf32>
    %239 = arith.addf %229, %238 : vector<16x16xf32>
    %c59 = arith.constant 59 : index
    %240 = memref.load %arg2[%c59] : memref<72xf32, #tpu.memory_space<smem>>
    %241 = vector.broadcast %240 : f32 to vector<16x16xf32>
    %242 = arith.mulf %241, %235 : vector<16x16xf32>
    %243 = arith.addf %233, %242 : vector<16x16xf32>
    %c0_98 = arith.constant 0 : index
    %c2_99 = arith.constant 2 : index
    %c2_100 = arith.constant 2 : index
    %c0_101 = arith.constant 0 : index
    %244 = vector.load %arg1[%c0_98, %c2_99, %c2_100, %c0_101] : memref<1x4x18x18xf32, #tpu.memory_space<vmem>>, vector<1x1x16x16xf32>
    %245 = vector.shape_cast %244 : vector<1x1x16x16xf32> to vector<16x16xf32>
    %c24 = arith.constant 24 : index
    %246 = memref.load %arg2[%c24] : memref<72xf32, #tpu.memory_space<smem>>
    %247 = vector.broadcast %246 : f32 to vector<16x16xf32>
    %248 = arith.mulf %247, %245 : vector<16x16xf32>
    %249 = arith.addf %239, %248 : vector<16x16xf32>
    %c60 = arith.constant 60 : index
    %250 = memref.load %arg2[%c60] : memref<72xf32, #tpu.memory_space<smem>>
    %251 = vector.broadcast %250 : f32 to vector<16x16xf32>
    %252 = arith.mulf %251, %245 : vector<16x16xf32>
    %253 = arith.addf %243, %252 : vector<16x16xf32>
    %c0_102 = arith.constant 0 : index
    %c2_103 = arith.constant 2 : index
    %c2_104 = arith.constant 2 : index
    %c1_105 = arith.constant 1 : index
    %254 = vector.load %arg1[%c0_102, %c2_103, %c2_104, %c1_105] : memref<1x4x18x18xf32, #tpu.memory_space<vmem>>, vector<1x1x16x16xf32>
    %255 = vector.shape_cast %254 : vector<1x1x16x16xf32> to vector<16x16xf32>
    %c25 = arith.constant 25 : index
    %256 = memref.load %arg2[%c25] : memref<72xf32, #tpu.memory_space<smem>>
    %257 = vector.broadcast %256 : f32 to vector<16x16xf32>
    %258 = arith.mulf %257, %255 : vector<16x16xf32>
    %259 = arith.addf %249, %258 : vector<16x16xf32>
    %c61 = arith.constant 61 : index
    %260 = memref.load %arg2[%c61] : memref<72xf32, #tpu.memory_space<smem>>
    %261 = vector.broadcast %260 : f32 to vector<16x16xf32>
    %262 = arith.mulf %261, %255 : vector<16x16xf32>
    %263 = arith.addf %253, %262 : vector<16x16xf32>
    %c0_106 = arith.constant 0 : index
    %c2_107 = arith.constant 2 : index
    %c2_108 = arith.constant 2 : index
    %c2_109 = arith.constant 2 : index
    %264 = vector.load %arg1[%c0_106, %c2_107, %c2_108, %c2_109] : memref<1x4x18x18xf32, #tpu.memory_space<vmem>>, vector<1x1x16x16xf32>
    %265 = vector.shape_cast %264 : vector<1x1x16x16xf32> to vector<16x16xf32>
    %c26 = arith.constant 26 : index
    %266 = memref.load %arg2[%c26] : memref<72xf32, #tpu.memory_space<smem>>
    %267 = vector.broadcast %266 : f32 to vector<16x16xf32>
    %268 = arith.mulf %267, %265 : vector<16x16xf32>
    %269 = arith.addf %259, %268 : vector<16x16xf32>
    %c62 = arith.constant 62 : index
    %270 = memref.load %arg2[%c62] : memref<72xf32, #tpu.memory_space<smem>>
    %271 = vector.broadcast %270 : f32 to vector<16x16xf32>
    %272 = arith.mulf %271, %265 : vector<16x16xf32>
    %273 = arith.addf %263, %272 : vector<16x16xf32>
    %c0_110 = arith.constant 0 : index
    %c3_111 = arith.constant 3 : index
    %c0_112 = arith.constant 0 : index
    %c0_113 = arith.constant 0 : index
    %274 = vector.load %arg1[%c0_110, %c3_111, %c0_112, %c0_113] : memref<1x4x18x18xf32, #tpu.memory_space<vmem>>, vector<1x1x16x16xf32>
    %275 = vector.shape_cast %274 : vector<1x1x16x16xf32> to vector<16x16xf32>
    %c27 = arith.constant 27 : index
    %276 = memref.load %arg2[%c27] : memref<72xf32, #tpu.memory_space<smem>>
    %277 = vector.broadcast %276 : f32 to vector<16x16xf32>
    %278 = arith.mulf %277, %275 : vector<16x16xf32>
    %279 = arith.addf %269, %278 : vector<16x16xf32>
    %c63 = arith.constant 63 : index
    %280 = memref.load %arg2[%c63] : memref<72xf32, #tpu.memory_space<smem>>
    %281 = vector.broadcast %280 : f32 to vector<16x16xf32>
    %282 = arith.mulf %281, %275 : vector<16x16xf32>
    %283 = arith.addf %273, %282 : vector<16x16xf32>
    %c0_114 = arith.constant 0 : index
    %c3_115 = arith.constant 3 : index
    %c0_116 = arith.constant 0 : index
    %c1_117 = arith.constant 1 : index
    %284 = vector.load %arg1[%c0_114, %c3_115, %c0_116, %c1_117] : memref<1x4x18x18xf32, #tpu.memory_space<vmem>>, vector<1x1x16x16xf32>
    %285 = vector.shape_cast %284 : vector<1x1x16x16xf32> to vector<16x16xf32>
    %c28 = arith.constant 28 : index
    %286 = memref.load %arg2[%c28] : memref<72xf32, #tpu.memory_space<smem>>
    %287 = vector.broadcast %286 : f32 to vector<16x16xf32>
    %288 = arith.mulf %287, %285 : vector<16x16xf32>
    %289 = arith.addf %279, %288 : vector<16x16xf32>
    %c64 = arith.constant 64 : index
    %290 = memref.load %arg2[%c64] : memref<72xf32, #tpu.memory_space<smem>>
    %291 = vector.broadcast %290 : f32 to vector<16x16xf32>
    %292 = arith.mulf %291, %285 : vector<16x16xf32>
    %293 = arith.addf %283, %292 : vector<16x16xf32>
    %c0_118 = arith.constant 0 : index
    %c3_119 = arith.constant 3 : index
    %c0_120 = arith.constant 0 : index
    %c2_121 = arith.constant 2 : index
    %294 = vector.load %arg1[%c0_118, %c3_119, %c0_120, %c2_121] : memref<1x4x18x18xf32, #tpu.memory_space<vmem>>, vector<1x1x16x16xf32>
    %295 = vector.shape_cast %294 : vector<1x1x16x16xf32> to vector<16x16xf32>
    %c29 = arith.constant 29 : index
    %296 = memref.load %arg2[%c29] : memref<72xf32, #tpu.memory_space<smem>>
    %297 = vector.broadcast %296 : f32 to vector<16x16xf32>
    %298 = arith.mulf %297, %295 : vector<16x16xf32>
    %299 = arith.addf %289, %298 : vector<16x16xf32>
    %c65 = arith.constant 65 : index
    %300 = memref.load %arg2[%c65] : memref<72xf32, #tpu.memory_space<smem>>
    %301 = vector.broadcast %300 : f32 to vector<16x16xf32>
    %302 = arith.mulf %301, %295 : vector<16x16xf32>
    %303 = arith.addf %293, %302 : vector<16x16xf32>
    %c0_122 = arith.constant 0 : index
    %c3_123 = arith.constant 3 : index
    %c1_124 = arith.constant 1 : index
    %c0_125 = arith.constant 0 : index
    %304 = vector.load %arg1[%c0_122, %c3_123, %c1_124, %c0_125] : memref<1x4x18x18xf32, #tpu.memory_space<vmem>>, vector<1x1x16x16xf32>
    %305 = vector.shape_cast %304 : vector<1x1x16x16xf32> to vector<16x16xf32>
    %c30 = arith.constant 30 : index
    %306 = memref.load %arg2[%c30] : memref<72xf32, #tpu.memory_space<smem>>
    %307 = vector.broadcast %306 : f32 to vector<16x16xf32>
    %308 = arith.mulf %307, %305 : vector<16x16xf32>
    %309 = arith.addf %299, %308 : vector<16x16xf32>
    %c66 = arith.constant 66 : index
    %310 = memref.load %arg2[%c66] : memref<72xf32, #tpu.memory_space<smem>>
    %311 = vector.broadcast %310 : f32 to vector<16x16xf32>
    %312 = arith.mulf %311, %305 : vector<16x16xf32>
    %313 = arith.addf %303, %312 : vector<16x16xf32>
    %c0_126 = arith.constant 0 : index
    %c3_127 = arith.constant 3 : index
    %c1_128 = arith.constant 1 : index
    %c1_129 = arith.constant 1 : index
    %314 = vector.load %arg1[%c0_126, %c3_127, %c1_128, %c1_129] : memref<1x4x18x18xf32, #tpu.memory_space<vmem>>, vector<1x1x16x16xf32>
    %315 = vector.shape_cast %314 : vector<1x1x16x16xf32> to vector<16x16xf32>
    %c31 = arith.constant 31 : index
    %316 = memref.load %arg2[%c31] : memref<72xf32, #tpu.memory_space<smem>>
    %317 = vector.broadcast %316 : f32 to vector<16x16xf32>
    %318 = arith.mulf %317, %315 : vector<16x16xf32>
    %319 = arith.addf %309, %318 : vector<16x16xf32>
    %c67 = arith.constant 67 : index
    %320 = memref.load %arg2[%c67] : memref<72xf32, #tpu.memory_space<smem>>
    %321 = vector.broadcast %320 : f32 to vector<16x16xf32>
    %322 = arith.mulf %321, %315 : vector<16x16xf32>
    %323 = arith.addf %313, %322 : vector<16x16xf32>
    %c0_130 = arith.constant 0 : index
    %c3_131 = arith.constant 3 : index
    %c1_132 = arith.constant 1 : index
    %c2_133 = arith.constant 2 : index
    %324 = vector.load %arg1[%c0_130, %c3_131, %c1_132, %c2_133] : memref<1x4x18x18xf32, #tpu.memory_space<vmem>>, vector<1x1x16x16xf32>
    %325 = vector.shape_cast %324 : vector<1x1x16x16xf32> to vector<16x16xf32>
    %c32 = arith.constant 32 : index
    %326 = memref.load %arg2[%c32] : memref<72xf32, #tpu.memory_space<smem>>
    %327 = vector.broadcast %326 : f32 to vector<16x16xf32>
    %328 = arith.mulf %327, %325 : vector<16x16xf32>
    %329 = arith.addf %319, %328 : vector<16x16xf32>
    %c68 = arith.constant 68 : index
    %330 = memref.load %arg2[%c68] : memref<72xf32, #tpu.memory_space<smem>>
    %331 = vector.broadcast %330 : f32 to vector<16x16xf32>
    %332 = arith.mulf %331, %325 : vector<16x16xf32>
    %333 = arith.addf %323, %332 : vector<16x16xf32>
    %c0_134 = arith.constant 0 : index
    %c3_135 = arith.constant 3 : index
    %c2_136 = arith.constant 2 : index
    %c0_137 = arith.constant 0 : index
    %334 = vector.load %arg1[%c0_134, %c3_135, %c2_136, %c0_137] : memref<1x4x18x18xf32, #tpu.memory_space<vmem>>, vector<1x1x16x16xf32>
    %335 = vector.shape_cast %334 : vector<1x1x16x16xf32> to vector<16x16xf32>
    %c33 = arith.constant 33 : index
    %336 = memref.load %arg2[%c33] : memref<72xf32, #tpu.memory_space<smem>>
    %337 = vector.broadcast %336 : f32 to vector<16x16xf32>
    %338 = arith.mulf %337, %335 : vector<16x16xf32>
    %339 = arith.addf %329, %338 : vector<16x16xf32>
    %c69 = arith.constant 69 : index
    %340 = memref.load %arg2[%c69] : memref<72xf32, #tpu.memory_space<smem>>
    %341 = vector.broadcast %340 : f32 to vector<16x16xf32>
    %342 = arith.mulf %341, %335 : vector<16x16xf32>
    %343 = arith.addf %333, %342 : vector<16x16xf32>
    %c0_138 = arith.constant 0 : index
    %c3_139 = arith.constant 3 : index
    %c2_140 = arith.constant 2 : index
    %c1_141 = arith.constant 1 : index
    %344 = vector.load %arg1[%c0_138, %c3_139, %c2_140, %c1_141] : memref<1x4x18x18xf32, #tpu.memory_space<vmem>>, vector<1x1x16x16xf32>
    %345 = vector.shape_cast %344 : vector<1x1x16x16xf32> to vector<16x16xf32>
    %c34 = arith.constant 34 : index
    %346 = memref.load %arg2[%c34] : memref<72xf32, #tpu.memory_space<smem>>
    %347 = vector.broadcast %346 : f32 to vector<16x16xf32>
    %348 = arith.mulf %347, %345 : vector<16x16xf32>
    %349 = arith.addf %339, %348 : vector<16x16xf32>
    %c70 = arith.constant 70 : index
    %350 = memref.load %arg2[%c70] : memref<72xf32, #tpu.memory_space<smem>>
    %351 = vector.broadcast %350 : f32 to vector<16x16xf32>
    %352 = arith.mulf %351, %345 : vector<16x16xf32>
    %353 = arith.addf %343, %352 : vector<16x16xf32>
    %c0_142 = arith.constant 0 : index
    %c3_143 = arith.constant 3 : index
    %c2_144 = arith.constant 2 : index
    %c2_145 = arith.constant 2 : index
    %354 = vector.load %arg1[%c0_142, %c3_143, %c2_144, %c2_145] : memref<1x4x18x18xf32, #tpu.memory_space<vmem>>, vector<1x1x16x16xf32>
    %355 = vector.shape_cast %354 : vector<1x1x16x16xf32> to vector<16x16xf32>
    %c35 = arith.constant 35 : index
    %356 = memref.load %arg2[%c35] : memref<72xf32, #tpu.memory_space<smem>>
    %357 = vector.broadcast %356 : f32 to vector<16x16xf32>
    %358 = arith.mulf %357, %355 : vector<16x16xf32>
    %359 = arith.addf %349, %358 : vector<16x16xf32>
    %c71 = arith.constant 71 : index
    %360 = memref.load %arg2[%c71] : memref<72xf32, #tpu.memory_space<smem>>
    %361 = vector.broadcast %360 : f32 to vector<16x16xf32>
    %362 = arith.mulf %361, %355 : vector<16x16xf32>
    %363 = arith.addf %353, %362 : vector<16x16xf32>
    %c0_146 = arith.constant 0 : index
    %c0_147 = arith.constant 0 : index
    %c0_148 = arith.constant 0 : index
    %c0_149 = arith.constant 0 : index
    %364 = vector.load %arg7[%c0_146, %c0_147, %c0_148, %c0_149] : memref<1x2x16x16xf32, #tpu.memory_space<vmem>>, vector<1x1x16x16xf32>
    %365 = vector.shape_cast %364 : vector<1x1x16x16xf32> to vector<16x16xf32>
    %366 = vector.shape_cast %359 : vector<16x16xf32> to vector<1x1x16x16xf32>
    tpu.vector_store %arg7[%c0_146, %c0_147, %c0_148, %c0_149], %366 {strides = array<i32>} : memref<1x2x16x16xf32, #tpu.memory_space<vmem>>, vector<1x1x16x16xf32>,
    %c0_150 = arith.constant 0 : index
    %c1_151 = arith.constant 1 : index
    %c0_152 = arith.constant 0 : index
    %c0_153 = arith.constant 0 : index
    %367 = vector.load %arg7[%c0_150, %c1_151, %c0_152, %c0_153] : memref<1x2x16x16xf32, #tpu.memory_space<vmem>>, vector<1x1x16x16xf32>
    %368 = vector.shape_cast %367 : vector<1x1x16x16xf32> to vector<16x16xf32>
    %369 = vector.shape_cast %363 : vector<16x16xf32> to vector<1x1x16x16xf32>
    tpu.vector_store %arg7[%c0_150, %c1_151, %c0_152, %c0_153], %369 {strides = array<i32>} : memref<1x2x16x16xf32, #tpu.memory_space<vmem>>, vector<1x1x16x16xf32>,
    %370 = tpu.concatenate %359, %363 in 1 : vector<16x16xf32>, vector<16x16xf32> -> vector<16x32xf32>
    %c0_154 = arith.constant 0 : index
    %c0_155 = arith.constant 0 : index
    %371 = vector.load %arg4[%c0_154, %c0_155] : memref<64x16xf32, #tpu.memory_space<vmem>>, vector<64x16xf32>
    %cst = arith.constant dense<0.000000e+00> : vector<64x32xf32>
    %372 = tpu.matmul %371, %370, %cst {dimension_numbers = #tpu.dot_dimension_numbers<[1], [0], [0], [1], [0, 0, 1, 1], [], []>} : vector<64x16xf32>, vector<16x32xf32>, vector<64x32xf32> -> vector<64x32xf32>
    %c0_156 = arith.constant 0 : index
    %c0_157 = arith.constant 0 : index
    %373 = vector.load %arg5[%c0_156, %c0_157] : memref<32x128xf32, #tpu.memory_space<vmem>>, vector<32x128xf32>
    %cst_158 = arith.constant dense<0.000000e+00> : vector<64x128xf32>
    %374 = tpu.matmul %372, %373, %cst_158 {dimension_numbers = #tpu.dot_dimension_numbers<[1], [0], [0], [1], [0, 0, 1, 1], [], []>} : vector<64x32xf32>, vector<32x128xf32>, vector<64x128xf32> -> vector<64x128xf32>
    %c0_159 = arith.constant 0 : index
    %c0_160 = arith.constant 0 : index
    %c0_161 = arith.constant 0 : index
    %375 = vector.load %arg6[%c0_159, %c0_160, %c0_161] : memref<1x64x128xf32, #tpu.memory_space<vmem>>, vector<1x64x128xf32>
    %376 = vector.shape_cast %375 : vector<1x64x128xf32> to vector<64x128xf32>
    %377 = vector.shape_cast %374 : vector<64x128xf32> to vector<1x64x128xf32>
    tpu.vector_store %arg6[%c0_159, %c0_160, %c0_161], %377 {strides = array<i32>} : memref<1x64x128xf32, #tpu.memory_space<vmem>>, vector<1x64x128xf32>,
    return
  }
  func.func @transform_0(%arg0: i32) -> (i32, i32, i32, i32) {
    %c0_i32 = arith.constant 0 : i32
    %c0_i32_0 = arith.constant 0 : i32
    %c0_i32_1 = arith.constant 0 : i32
    %c0_i32_2 = arith.constant 0 : i32
    return %arg0, %c0_i32, %c0_i32_0, %c0_i32_1 : i32, i32, i32, i32
  }
  func.func @transform_1(%arg0: i32) -> i32 {
    %c0_i32 = arith.constant 0 : i32
    %c0_i32_0 = arith.constant 0 : i32
    return %c0_i32 : i32
  }
  func.func @transform_2(%arg0: i32) -> i32 {
    %c0_i32 = arith.constant 0 : i32
    %c0_i32_0 = arith.constant 0 : i32
    return %c0_i32 : i32
  }
  func.func @transform_3(%arg0: i32) -> (i32, i32) {
    %c0_i32 = arith.constant 0 : i32
    %c0_i32_0 = arith.constant 0 : i32
    %c0_i32_1 = arith.constant 0 : i32
    return %c0_i32, %c0_i32_0 : i32, i32
  }
  func.func @transform_4(%arg0: i32) -> (i32, i32) {
    %c0_i32 = arith.constant 0 : i32
    %c0_i32_0 = arith.constant 0 : i32
    %c0_i32_1 = arith.constant 0 : i32
    return %c0_i32, %c0_i32_0 : i32, i32
  }
  func.func @transform_5(%arg0: i32) -> (i32, i32, i32) {
    %c0_i32 = arith.constant 0 : i32
    %c0_i32_0 = arith.constant 0 : i32
    %c0_i32_1 = arith.constant 0 : i32
    return %arg0, %c0_i32, %c0_i32_0 : i32, i32, i32
  }
  func.func @transform_6(%arg0: i32) -> (i32, i32, i32, i32) {
    %c0_i32 = arith.constant 0 : i32
    %c0_i32_0 = arith.constant 0 : i32
    %c0_i32_1 = arith.constant 0 : i32
    %c0_i32_2 = arith.constant 0 : i32
    return %arg0, %c0_i32, %c0_i32_0, %c0_i32_1 : i32, i32, i32, i32
  }
}

</mosaic_0001>

<bundles_post_ra>
// kernel: offset_net_forward.1
= control target key start
LH: loop header
LB: loop body
LE: loop exit
PB: predicated region body
PF: predicated region fallthrough
CT: control target
= control target key end

     0   :  { %12 = vsyncpa [#allocation4], 0  ;;  %s2458_s0 = inlined_call_operand.vmem [shape: f32[2,4,18,18], index: 0, kind: input, shape index: {}]   ;;  %s2459_s1 = inlined_call_operand.vmem [shape: f32[72], index: 1, kind: input, shape index: {}]   ;;  %s2460_s2 = inlined_call_operand.vmem [shape: f32[2], index: 2, kind: input, shape index: {}]   ;;  %s2461_s3 = inlined_call_operand.vmem [shape: f32[64,16], index: 3, kind: input, shape index: {}]   ;;  %s2462_s4 = inlined_call_operand.vmem [shape: f32[32,128], index: 4, kind: input, shape index: {}]   ;;  %s2463_s5 = inlined_call_operand.vmem [shape: f32[2,64,128], index: 5, kind: output, shape index: {0}]   ;;  %s2464_s6 = inlined_call_operand.hbm [shape: f32[2,2,16,16], index: 6, kind: output, shape index: {1}]  }
   0x1   :  { %13 = vsyncpa [#allocation6], 0 }
   0x2   :  { %14 = vsyncpa [#allocation3], 0 }
   0x3   :  { %16 = vsyncpa [#allocation3 + $0x1], 0  ;;  %s1785_s21 = smov 0   ;;  %s1787_s22 = smov 0  }
   0x4   :  { %s1789_s23 = smov 0   ;;  %s1791_s24 = smov 0  }
   0x5 LB: > { %s1806_s25 = sadd.s32 4294967295, %s1741_s24   ;;  %s1437_s26 = sadd.s32 4294967294, %s1741_s24   ;;  %s1741_s24 = sphi %s1791_s24, %s2470_s24   ;;  %s1737_s23 = sphi %s1789_s23, %s2469_s23   ;;  %s1733_s22 = sphi %s1787_s22, %s2468_s22   ;;  %s1729_s21 = sphi %s1785_s21, %s2467_s21  }
   0x6   : > { %s1810_s27 = sadd.s32 1, %s1741_s24   ;;  %s165_s28 = sadd.s32 1, %s1737_s23 }
   0x7   : > { %s162_s29 = ssub.s32 %s1741_s24, %s1810_s27  ;;  %p175_p0 = scmp.ne.s32.totalorder %s1737_s23, %s1733_s22 }
   0x8   : > { %p163_p1 = scmp.eq.s32.totalorder %s162_s29, 0  ;;  %p176_p2 = scmp.eq.s32.totalorder %s1806_s25, 1 }
   0x9   : > { %p181_p3 = scmp.ne.s32.totalorder %s1733_s22, %s1729_s21  ;;  %p182_p4 = scmp.eq.s32.totalorder %s1437_s26, 1 }
   0xa   : > { %s1821_s30 = scalar_select %p163_p1, %s1737_s23, %s165_s28  }
   0xb   : > { %p1823_p5 = por %p176_p2, %p175_p0  ;;  %p1827_p6 = por %p182_p4, %p181_p3 }
   0xc   : > { %p1438_p7 = scmp.ge.s32.totalorder %s1741_s24, 1  ;;  %p189_p8 = scmp.lt.s32.totalorder %s1741_s24, 3 }
   0xd   : > { %p1592_p9 = scmp.eq.s32.totalorder %s1806_s25, 0  ;;  %s201_s11 = sshll.u32 %s2459_s1, 4  ;;  %s202_s11 = int_to_ptr.vmem [resolvable:$true] %s201_s11 }
   0xe   : > { %p190_p10 = pnand %p1438_p7, %p189_p8  ;;  %s211_s14 = sshll.u32 %s2460_s2, 4  ;;  %s212_s14 = int_to_ptr.vmem [resolvable:$true] %s211_s14 }
   0xf   : > { %s1743_s15 = smov [#allocation2]   ;;  %s1744_s16 = smov [#allocation5]  }
  0x10   : > { %p1581_p11 = pneg %p190_p10 }
  0x11   : > { %238 = sbr.rel (%p190_p10) target bundleno = 768 (0x300), region = 40 }
  0x12   : > { %p1582_p12 = pnand %p1592_p9, %p1581_p11 }
  0x14   : > { %1584 = dma.vmem_to_smem (!%p1582_p12), %s202_s11, 16, %s1743_s15, [#allocation4]  }
  0x15   : > { %1587 = dma.vmem_to_smem (!%p1582_p12), %s212_s14, 16, %s1744_s16, [#allocation6]  }
  0x16   : > { %1716 = dma.done.wait (%p1592_p9), [#allocation4], 16  }
  0x17   : > { %1718 = vsyncadd (%p1592_p9), [#allocation4], 4294967280 }
  0x18   : > { %1720 = dma.done.wait (%p1592_p9), [#allocation6], 16  }
  0x19   : > { %1722 = vsyncadd (%p1592_p9), [#allocation6], 4294967280 }
  0x1a   : > { %250 = sfence }
  0x1b   : > { %p280_p13 = scmp.lt.s32.totalorder %s1806_s25, 1  ;;  %s1454_s17 = sld [smem:[#allocation2 + $0x26]]  ;;  %vm1137_vm0 = vcmask 130048   ;;  %vm1230_vm1 = vcmask 261120  }
  0x1c   : > { %s1452_s19 = sld [smem:[#allocation2 + $0x25]]  ;;  %s1745_s10 = smov 126  }
  0x1d   : > { %s1852_s18 = scalar_select %p280_p13, %s1806_s25, 1 }
  0x1e   : > { %s1458_s26 = sld [smem:[#allocation2 + $0x28]]  ;;  %s1746_s12 = smov 127  }
  0x1f   : > { %s1570_s20 = smul.u32 96, %s1852_s18  ;;  %s1460_s11 = sld [smem:[#allocation2 + $0x29]] }
  0x20   : > { %s1464_s13 = sld [smem:[#allocation2 + $0x2b]] }
  0x21   : > { %s1858_s9 = scalar_lea.vmem %s2458_s0, %s1570_s20  ;;  %v351_v1 = vstv %s1454_s17  ;;  %s1466_s14 = sld [smem:[#allocation2 + $0x2c]] }
  0x22   : > { %v1861_v0 = vld [vmem:[%s1858_s9 + $0x8] sm:$0xff]  ;;  %v323_v4 = vstv %s1452_s19  ;;  %v1870_v7 = vld [vmem:[%s1858_s9] sm:$0xff]  ;;  %s1472_s15 = sld [smem:[#allocation2 + $0x2e]]  ;;  %v1901_v24 = vld [vmem:[%s1858_s9 + $0x18] sm:$0xff] }
  0x23   : > { %v353_v2 = vmul.f32 %v351_v1, %v1861_v0  ;;  %v1865_v3 = vld [vmem:[%s1858_s9 + $0x9] sm:$0xff]  ;;  %v325_v5 = vmul.f32 %v323_v4, %v1861_v0  ;;  %v352_v9 = vmul.f32 %v351_v1, %v1870_v7  ;;  %v324_v10 = vmul.f32 %v323_v4, %v1870_v7  ;;  %v1878_v11 = vld [vmem:[%s1858_s9 + $0x1] sm:$0xff]  ;;  %s1474_s16 = sld [smem:[#allocation2 + $0x2f]]  ;;  %v1920_v35 = vld [vmem:[%s1858_s9 + $0x19] sm:$0xff] }
  0x24   : > { %v393_v6 = vstv %s1458_s26  ;;  %v1887_v16 = vld [vmem:[%s1858_s9 + $0xa] sm:$0xff]  ;;  %v1893_v20 = vld [vmem:[%s1858_s9 + $0x2] sm:$0xff]  ;;  %s1480_s17 = sld [smem:[#allocation2 + $0x31]]  ;;  %v1935_v44 = vld [vmem:[%s1858_s9 + $0x1a] sm:$0xff] }
  0x25   : > { %358 = vrot.lane.b32.xlu1 %v353_v2, %s1745_s10  ;;  %v395_v8 = vmul.f32 %v393_v6, %v1865_v3  ;;  %330 = vrot.lane.b32.xlu0 %v325_v5, %s1746_s12  ;;  %v394_v12 = vmul.f32 %v393_v6, %v1878_v11  ;;  %v421_v13 = vstv %s1460_s11  ;;  %v1905_v26 = vld [vmem:[%s1858_s9 + $0x20] sm:$0xff]  ;;  %s1482_s19 = sld [smem:[#allocation2 + $0x32]] }
  0x26   : > { %v422_v14 = vmul.f32 %v421_v13, %v1878_v11  ;;  %v423_v15 = vmul.f32 %v421_v13, %v1865_v3  ;;  %v463_v17 = vstv %s1464_s13  ;;  %v1913_v31 = vld [vmem:[%s1858_s9 + $0x21] sm:$0xff]  ;;  %s1488_s20 = sld [smem:[#allocation2 + $0x34]]  ;;  %v1943_v48 = vld [vmem:[%s1858_s9 + $0x30] sm:$0xff]  ;;  %v1947_v50 = vld [vmem:[%s1858_s9 + $0x38] sm:$0xff] }
  0x27   : > { %400 = vrot.lane.b32.xlu2 %v395_v8, %s1746_s12  ;;  %v465_v18 = vmul.f32 %v463_v17, %v1887_v16  ;;  %v491_v19 = vstv %s1466_s14  ;;  %v464_v22 = vmul.f32 %v463_v17, %v1893_v20  ;;  %s1490_s26 = sld [smem:[#allocation2 + $0x35]]  ;;  %v1929_v40 = vld [vmem:[%s1858_s9 + $0x22] sm:$0xff]  ;;  %v1961_v59 = vld [vmem:[%s1858_s9 + $0x39] sm:$0xff] }
  0x28   : > { %v493_v21 = vmul.f32 %v491_v19, %v1887_v16  ;;  %v492_v23 = vmul.f32 %v491_v19, %v1893_v20  ;;  %v534_v25 = vstv %s1472_s15  ;;  %s1496_s28 = sld [smem:[#allocation2 + $0x37]]  ;;  %v1971_v4 = vld [vmem:[%s1858_s9 + $0x31] sm:$0xff]  ;;  %v1990_v17 = vld [vmem:[%s1858_s9 + $0x3a] sm:$0xff] }
  0x29   : > { %v535_v27 = vmul.f32 %v1901_v24, %v534_v25  ;;  %v536_v28 = vmul.f32 %v1905_v26, %v534_v25  ;;  %v562_v29 = vstv %s1474_s16  ;;  %s1498_s29 = sld [smem:[#allocation2 + $0x38]] }
  0x2a   : > { %v564_v30 = vmul.f32 %v1905_v26, %v562_v29  ;;  %v604_v32 = vstv %s1480_s17  ;;  %v563_v34 = vmul.f32 %v1901_v24, %v562_v29  ;;  %s1451_s11 = sld [smem:[#allocation2 + $0x1]] }
  0x2b   : > { %v606_v33 = vmul.f32 %v1913_v31, %v604_v32  ;;  %v605_v36 = vmul.f32 %v1920_v35, %v604_v32  ;;  %v632_v37 = vstv %s1482_s19  ;;  %s1504_s13 = sld [smem:[#allocation2 + $0x3a]] }
  0x2c   : > { %v633_v38 = vmul.f32 %v1920_v35, %v632_v37  ;;  %v634_v39 = vmul.f32 %v1913_v31, %v632_v37  ;;  %v674_v41 = vstv %s1488_s20  ;;  %s1453_s14 = sld [smem:[#allocation2 + $0x2]] }
  0x2d   : > { %356 = vrot.lane.b32.xlu1 %v352_v9, %s1745_s10  ;;  %328 = vrot.lane.b32.xlu0 %v324_v10, %s1746_s12  ;;  %v676_v42 = vmul.f32 %v1929_v40, %v674_v41  ;;  %v702_v43 = vstv %s1490_s26  ;;  %v675_v46 = vmul.f32 %v1935_v44, %v674_v41  ;;  %s1506_s15 = sld [smem:[#allocation2 + $0x3b]] }
  0x2e   : > { %v704_v45 = vmul.f32 %v1929_v40, %v702_v43  ;;  %v703_v47 = vmul.f32 %v1935_v44, %v702_v43  ;;  %v745_v49 = vstv %s1496_s28  ;;  %s1457_s16 = sld [smem:[#allocation2 + $0x4]] }
  0x2f   : > { %398 = vrot.lane.b32.xlu2 %v394_v12, %s1746_s12  ;;  %v746_v51 = vmul.f32 %v1943_v48, %v745_v49  ;;  %v747_v52 = vmul.f32 %v1947_v50, %v745_v49  ;;  %v773_v53 = vstv %s1498_s29  ;;  %s1459_s17 = sld [smem:[#allocation2 + $0x5]] }
  0x30   : > { %v775_v54 = vmul.f32 %v1947_v50, %v773_v53  ;;  %v309_v55 = vstv %s1451_s11  ;;  %v774_v56 = vmul.f32 %v1943_v48, %v773_v53  ;;  %s1512_s19 = sld [smem:[#allocation2 + $0x3d]] }
  0x31   : > { %v311_v57 = vmul.f32 %v309_v55, %v1861_v0  ;;  %v310_v58 = vmul.f32 %v309_v55, %v1870_v7  ;;  %v815_v60 = vstv %s1504_s13  ;;  %s1984_s20 = sld [smem:[#allocation2 + $0x7]] }
  0x32   : > { %v337_v61 = vstv %s1453_s14  ;;  %v817_v62 = vmul.f32 %v1961_v59, %v815_v60  ;;  %v816_v6 = vmul.f32 %v1971_v4, %v815_v60  ;;  %s1987_s26 = sld [smem:[#allocation2 + $0x24]] }
  0x33   : > { %v339_v63 = vmul.f32 %v337_v61, %v1861_v0  ;;  %v338_v1 = vmul.f32 %v337_v61, %v1870_v7  ;;  %v843_v2 = vstv %s1506_s15  ;;  %s1514_s28 = sld [smem:[#allocation2 + $0x3e]] }
  0x34   : > { %v845_v5 = vmul.f32 %v1961_v59, %v843_v2  ;;  %v379_v8 = vstv %s1457_s16  ;;  %v844_v13 = vmul.f32 %v1971_v4, %v843_v2  ;;  %s2000_s29 = sld [smem:[#allocation5 + $0x1]] }
  0x35   : > { %426 = vrot.lane.b32.xlu1 %v422_v14, %s1745_s10  ;;  %428 = vrot.lane.b32.xlu0 %v423_v15, %s1745_s10  ;;  %v381_v9 = vmul.f32 %v379_v8, %v1865_v3  ;;  %v380_v10 = vmul.f32 %v379_v8, %v1878_v11  ;;  %v407_v14 = vstv %s1459_s17  ;;  %s2005_s11 = sld [smem:[#allocation2 + $0x8]] }
  0x36   : > { %v409_v15 = vmul.f32 %v407_v14, %v1865_v3  ;;  %v408_v19 = vmul.f32 %v407_v14, %v1878_v11  ;;  %s2009_s13 = sld [smem:[#allocation2 + $0x27]] }
  0x37   : > { %470 = vrot.lane.b32.xlu2 %v465_v18, %s1746_s12  ;;  %v885_v18 = vstv %s1512_s19  ;;  %s2018_s14 = sld [smem:[#allocation2 + $0x40]] }
  0x38   : > { %s2036_s15 = sld [smem:[#allocation2 + $0x41]] }
  0x39   : > { %v913_v29 = vstv %s1514_s28  ;;  %s2040_s16 = sld [smem:[#allocation2 + $0x2a]] }
  0x3a   : > { %s1471_s17 = sld [smem:[#allocation2 + $0xa]] }
  0x3b   : > { %s2056_s19 = sld [smem:[#allocation2 + $0x43]] }
  0x3c   : > { %s2076_s28 = sld [smem:[#allocation2 + $0x44]] }
  0x3d   : > { %498 = vrot.lane.b32.xlu1 %v493_v21, %s1745_s10  ;;  %468 = vrot.lane.b32.xlu0 %v464_v22, %s1746_s12  ;;  %v1995_v21 = vld [vmem:[%s1858_s9 + $0x32] sm:$0xff] }
  0x3e   : > { %v886_v25 = vmul.f32 %v1995_v21, %v885_v18  ;;  %v914_v37 = vmul.f32 %v1995_v21, %v913_v29 }
  0x3f   : > { %496 = vrot.lane.b32.xlu2 %v492_v23, %s1745_s10  ;;  %v887_v23 = vmul.f32 %v1990_v17, %v885_v18 }
  0x45   : > { %539 = vrot.lane.b32.xlu1 %v535_v27, %s1746_s12  ;;  %541 = vrot.lane.b32.xlu0 %v536_v28, %s1746_s12  ;;  %v449_v27 = vstv %s1984_s20  ;;  %v303_v28 = vstv %s1987_s26  ;;  %s2062_s20 = sld [smem:[#allocation2 + $0xb]] }
  0x46   : > { %v305_v32 = vmul.f32 %v303_v28, %v1861_v0  ;;  %v304_v49 = vmul.f32 %v303_v28, %v1870_v7  ;;  %v450_v53 = vmul.f32 %v449_v27, %v1893_v20  ;;  %s1470_s26 = sld [smem:[#allocation2 + $0x2d]] }
  0x47   : > { %569 = vrot.lane.b32.xlu2 %v564_v30, %s1745_s10  ;;  %v451_v30 = vmul.f32 %v449_v27, %v1887_v16 }
  0x4d   : > { %611 = vrot.lane.b32.xlu1 %v606_v33, %s1746_s12  ;;  %567 = vrot.lane.b32.xlu0 %v563_v34, %s1745_s10  ;;  %v915_v34 = vmul.f32 %v1990_v17, %v913_v29 }
  0x4f   : > { %609 = vrot.lane.b32.xlu2 %v605_v36, %s1746_s12  ;;  %v293_v36 = vstv %s2000_s29  ;;  %s2079_s29 = sld [smem:[#allocation2 + $0x30]] }
  0x55   : > { %637 = vrot.lane.b32.xlu1 %v633_v38, %s1745_s10  ;;  %639 = vrot.lane.b32.xlu0 %v634_v39, %s1745_s10  ;;  %v307_v38 = vadd.f32 %v305_v32, %v293_v36  ;;  %v477_v39 = vstv %s2005_s11  ;;  %s2088_s11 = sld [smem:[#allocation2 + $0xd]] }
  0x56   : > { %v478_v8 = vmul.f32 %v477_v39, %v1893_v20 }
  0x57   : > { %681 = vrot.lane.b32.xlu2 %v676_v42, %s1746_s12  ;;  %v373_v42 = vstv %s2009_s13  ;;  %s2107_s13 = sld [smem:[#allocation2 + $0xe]] }
  0x5d   : > { %709 = vrot.lane.b32.xlu1 %v704_v45, %s1745_s10  ;;  %679 = vrot.lane.b32.xlu0 %v675_v46, %s1746_s12  ;;  %v479_v45 = vmul.f32 %v477_v39, %v1887_v16  ;;  %v2028_v46 = vld [vmem:[%s1858_s9 + $0x50] sm:$0xff]  ;;  %v1026_v39 = vstv %s2056_s19  ;;  %s2133_s19 = sld [smem:[#allocation2 + $0x10]] }
  0x5f   : > { %707 = vrot.lane.b32.xlu2 %v703_v47, %s1745_s10 }
  0x65   : > { %750 = vrot.lane.b32.xlu1 %v746_v51, %s1746_s12  ;;  %752 = vrot.lane.b32.xlu0 %v747_v52, %s1746_s12  ;;  %v375_v52 = vmul.f32 %v373_v42, %v1865_v3 }
  0x67   : > { %780 = vrot.lane.b32.xlu2 %v775_v54, %s1745_s10  ;;  %v956_v54 = vstv %s2018_s14  ;;  %s2111_s14 = sld [smem:[#allocation2]] }
  0x6d   : > { %778 = vrot.lane.b32.xlu1 %v774_v56, %s1745_s10  ;;  %316 = vrot.lane.b32.xlu0 %v311_v57, %s1746_s12  ;;  %v958_v56 = vmul.f32 %v2028_v46, %v956_v54  ;;  %v306_v57 = vadd.f32 %v304_v49, %v293_v36  ;;  %v514_v49 = vstv %s1470_s26  ;;  %s1494_s26 = sld [smem:[#allocation2 + $0x36]] }
  0x6f   : > { %314 = vrot.lane.b32.xlu2 %v310_v58, %s1746_s12  ;;  %v2043_v58 = vld [vmem:[%s1858_s9 + $0x48] sm:$0xff] }
  0x75   : > { %822 = vrot.lane.b32.xlu1 %v817_v62, %s1746_s12  ;;  %344 = vrot.lane.b32.xlu0 %v339_v63, %s1745_s10 }
  0x77   : > { %342 = vrot.lane.b32.xlu2 %v338_v1, %s1745_s10  ;;  %v957_v1 = vmul.f32 %v2043_v58, %v956_v54 }
  0x7d   : > { %850 = vrot.lane.b32.xlu1 %v845_v5, %s1745_s10  ;;  %820 = vrot.lane.b32.xlu0 %v816_v6, %s1746_s12  ;;  %v374_v5 = vmul.f32 %v373_v42, %v1878_v11 }
  0x7f   : > { %386 = vrot.lane.b32.xlu2 %v381_v9, %s1746_s12  ;;  %v984_v9 = vstv %s2036_s15  ;;  %s2114_s15 = sld [smem:[#allocation2 + $0x33]] }
  0x80   : > { %v985_v27 = vmul.f32 %v2043_v58, %v984_v9 }
  0x81   : > { %v401_v12 = vpop.permute.xlu2 %400 }
  0x85   : > { %384 = vrot.lane.b32.xlu1 %v380_v10, %s1746_s12  ;;  %848 = vrot.lane.b32.xlu0 %v844_v13, %s1745_s10  ;;  %v986_v13 = vmul.f32 %v2028_v46, %v984_v9 }
  0x87   : > { %414 = vrot.lane.b32.xlu2 %v409_v15, %s1745_s10 }
  0x89   : > { %v1997_v22 = vpop.permute.xlu2 %398 }
  0x8d   : > { %412 = vrot.lane.b32.xlu1 %v408_v19, %s1745_s10  ;;  %892 = vrot.lane.b32.xlu0 %v887_v23, %s1746_s12  ;;  %v520_v23 = vstv %s1471_s17  ;;  %s2121_s17 = sld [smem:[#allocation5]] }
  0x8e   : > { %v521_v36 = vmul.f32 %v1901_v24, %v520_v23 }
  0x8f   : > { %890 = vrot.lane.b32.xlu2 %v886_v25, %s1746_s12 }
  0x91   : > { %v2014_v33 = vpop.permute.xlu2 %470 }
  0x95   : > { %456 = vrot.lane.b32.xlu1 %v451_v30, %s1746_s12  ;;  %920 = vrot.lane.b32.xlu0 %v915_v34, %s1745_s10 }
  0x97   : > { %v359_v41 = vpop.permute.xlu1 %358  ;;  %918 = vrot.lane.b32.xlu2 %v914_v37, %s1745_s10  ;;  %v331_v43 = vpop.permute.xlu0 %330 }
  0x98   : > { %v335_v47 = vadd.f32 %v331_v43, %v307_v38  ;;  %v2073_v38 = vld [vmem:[%s1858_s9 + $0x51] sm:$0xff] }
  0x99   : > { %v2031_v51 = vpop.permute.xlu2 %496 }
  0x9a   : > { %v363_v55 = vadd.f32 %v359_v41, %v335_v47 }
  0x9c   : > { %v377_v60 = vadd.f32 %v375_v52, %v363_v55 }
  0x9d   : > { %484 = vrot.lane.b32.xlu1 %v479_v45, %s1745_s10  ;;  %454 = vrot.lane.b32.xlu0 %v450_v53, %s1746_s12  ;;  %v548_v45 = vstv %s2062_s20  ;;  %v515_v53 = vmul.f32 %v1901_v24, %v514_v49  ;;  %s2145_s20 = sld [smem:[#allocation2 + $0x47]] }
  0x9e   : > { %v405_v62 = vadd.f32 %v401_v12, %v377_v60  ;;  %v443_v12 = vstv %s2040_s16  ;;  %v550_v55 = vmul.f32 %v1905_v26, %v548_v45  ;;  %v549_v60 = vmul.f32 %v1901_v24, %v548_v45  ;;  %s2117_s16 = sld [smem:[#allocation2 + $0x46]] }
  0x9f   : > { %v357_v61 = vpop.permute.xlu1 %356  ;;  %963 = vrot.lane.b32.xlu2 %v958_v56, %s1746_s12  ;;  %v329_v63 = vpop.permute.xlu0 %328  ;;  %v445_v19 = vmul.f32 %v443_v12, %v1887_v16  ;;  %v444_v34 = vmul.f32 %v443_v12, %v1893_v20 }
  0xa0   : > { %v334_v2 = vadd.f32 %v329_v63, %v306_v57  ;;  %v516_v57 = vmul.f32 %v1905_v26, %v514_v49 }
  0xa1   : > { %v2049_v6 = vpop.permute.xlu2 %569 }
  0xa2   : > { %v362_v10 = vadd.f32 %v357_v61, %v334_v2 }
  0xa4   : > { %v376_v14 = vadd.f32 %v374_v5, %v362_v10 }
  0xa5   : > { %961 = vrot.lane.b32.xlu1 %v957_v1, %s1746_s12  ;;  %482 = vrot.lane.b32.xlu0 %v478_v8, %s1745_s10  ;;  %v584_v1 = vstv %s2079_s29  ;;  %v2098_v8 = vld [vmem:[%s1858_s9 + $0x49] sm:$0xff]  ;;  %s2176_s29 = sld [smem:[#allocation2 + $0x39]] }
  0xa6   : > { %v404_v18 = vadd.f32 %v1997_v22, %v376_v14  ;;  %v522_v22 = vmul.f32 %v1905_v26, %v520_v23  ;;  %v1027_v14 = vmul.f32 %v2098_v8, %v1026_v39 }
  0xa7   : > { %v427_v15 = vpop.permute.xlu1 %426  ;;  %991 = vrot.lane.b32.xlu2 %v986_v13, %s1745_s10  ;;  %v429_v25 = vpop.permute.xlu0 %428  ;;  %v586_v13 = vmul.f32 %v1913_v31, %v584_v1 }
  0xa8   : > { %v432_v28 = vadd.f32 %v427_v15, %v404_v18  ;;  %v433_v29 = vadd.f32 %v429_v25, %v405_v62  ;;  %v1054_v62 = vstv %s2076_s28  ;;  %v590_v15 = vstv %s2088_s11  ;;  %s2160_s28 = sld [smem:[#allocation2 + $0x11]] }
  0xa9   : > { %v2065_v30 = vpop.permute.xlu2 %609  ;;  %v1056_v9 = vmul.f32 %v2073_v38, %v1054_v62  ;;  %s2181_s11 = sld [smem:[#allocation2 + $0x14]] }
  0xaa   : > { %v447_v32 = vadd.f32 %v445_v19, %v433_v29  ;;  %v446_v43 = vadd.f32 %v444_v34, %v432_v28  ;;  %v592_v19 = vmul.f32 %v1913_v31, %v590_v15  ;;  %v591_v29 = vmul.f32 %v1920_v35, %v590_v15 }
  0xab   : > { %v1055_v34 = vmul.f32 %v2098_v8, %v1054_v62  ;;  %v1124_v15 = vstv %s2145_s20  ;;  %s2237_s20 = sld [smem:[#allocation2 + $0x6]] }
  0xac   : > { %v475_v37 = vadd.f32 %v2014_v33, %v447_v32  ;;  %v1028_v33 = vmul.f32 %v2073_v38, %v1026_v39 }
  0xad   : > { %989 = vrot.lane.b32.xlu1 %v985_v27, %s1745_s10  ;;  %527 = vrot.lane.b32.xlu0 %v522_v22, %s1746_s12 }
  0xaf   : > { %v499_v41 = vpop.permute.xlu1 %498  ;;  %525 = vrot.lane.b32.xlu2 %v521_v36, %s1746_s12  ;;  %v469_v47 = vpop.permute.xlu0 %468  ;;  %v618_v36 = vstv %s2107_s13  ;;  %s2186_s13 = sld [smem:[#allocation2 + $0x16]] }
  0xb0   : > { %v503_v42 = vadd.f32 %v499_v41, %v475_v37  ;;  %v474_v52 = vadd.f32 %v469_v47, %v446_v43  ;;  %v620_v39 = vmul.f32 %v1913_v31, %v618_v36  ;;  %v297_v41 = vstv %s2111_s14  ;;  %s1505_s14 = sld [smem:[#allocation2 + $0x17]] }
  0xb1   : > { %v2085_v54 = vpop.permute.xlu2 %681  ;;  %v298_v47 = vmul.f32 %v297_v41, %v1870_v7 }
  0xb2   : > { %v502_v56 = vadd.f32 %v2031_v51, %v474_v52  ;;  %v518_v5 = vadd.f32 %v516_v57, %v503_v42  ;;  %v654_v42 = vstv %s2114_s15  ;;  %v2141_v52 = vld [vmem:[%s1858_s9 + $0x52] sm:$0xff]  ;;  %v2150_v57 = vld [vmem:[%s1858_s9 + $0x4a] sm:$0xff]  ;;  %s1495_s9 = sld [smem:[#allocation2 + $0x13]] }
  0xb3   : > { %v656_v49 = vmul.f32 %v1929_v40, %v654_v42  ;;  %s2190_s15 = sld [smem:[#allocation2 + $0x3]] }
  0xb4   : > { %v517_v61 = vadd.f32 %v515_v53, %v502_v56  ;;  %v1096_v53 = vstv %s2117_s16  ;;  %v619_v56 = vmul.f32 %v1920_v35, %v618_v36  ;;  %s2217_s16 = sld [smem:[#allocation2 + $0x19]] }
  0xb5   : > { %1033 = vrot.lane.b32.xlu1 %v1028_v33, %s1746_s12  ;;  %555 = vrot.lane.b32.xlu0 %v550_v55, %s1745_s10 }
  0xb7   : > { %v540_v63 = vpop.permute.xlu1 %539  ;;  %553 = vrot.lane.b32.xlu2 %v549_v60, %s1745_s10  ;;  %v542_v51 = vpop.permute.xlu0 %541 }
  0xb8   : > { %v545_v2 = vadd.f32 %v540_v63, %v517_v61  ;;  %v546_v10 = vadd.f32 %v542_v51, %v518_v5  ;;  %v1098_v61 = vmul.f32 %v2141_v52, %v1096_v53  ;;  %v660_v51 = vstv %s2133_s19  ;;  %s1519_s19 = sld [smem:[#allocation2 + $0x1c]] }
  0xb9   : > { %v2103_v12 = vpop.permute.xlu2 %707 }
  0xba   : > { %v574_v18 = vadd.f32 %v2049_v6, %v546_v10  ;;  %v585_v6 = vmul.f32 %v1920_v35, %v584_v1  ;;  %v655_v1 = vmul.f32 %v1935_v44, %v654_v42 }
  0xbc   : > { %v588_v23 = vadd.f32 %v586_v13, %v574_v18 }
  0xbd   : > { %1061 = vrot.lane.b32.xlu1 %v1056_v9, %s1745_s10  ;;  %1031 = vrot.lane.b32.xlu0 %v1027_v14, %s1746_s12 }
  0xbf   : > { %v612_v25 = vpop.permute.xlu1 %611  ;;  %597 = vrot.lane.b32.xlu2 %v592_v19, %s1746_s12  ;;  %v568_v28 = vpop.permute.xlu0 %567  ;;  %v662_v19 = vmul.f32 %v1929_v40, %v660_v51 }
  0xc0   : > { %v616_v27 = vadd.f32 %v612_v25, %v588_v23  ;;  %v573_v22 = vadd.f32 %v568_v28, %v545_v2  ;;  %v1097_v2 = vmul.f32 %v2150_v57, %v1096_v53  ;;  %v725_v23 = vstv %s1494_s26  ;;  %s1521_s26 = sld [smem:[#allocation2 + $0x1d]] }
  0xc1   : > { %v2124_v32 = vpop.permute.xlu2 %780 }
  0xc2   : > { %v587_v37 = vadd.f32 %v585_v6, %v573_v22  ;;  %v1126_v6 = vmul.f32 %v2141_v52, %v1124_v15  ;;  %v727_v22 = vmul.f32 %v1947_v50, %v725_v23 }
  0xc4   : > { %v615_v43 = vadd.f32 %v2065_v30, %v587_v37  ;;  %v291_v30 = vstv %s2121_s17  ;;  %v688_v37 = vstv %s2160_s28  ;;  %s1513_s17 = sld [smem:[#allocation2 + $0x1a]] }
  0xc5   : > { %595 = vrot.lane.b32.xlu1 %v591_v29, %s1746_s12  ;;  %1059 = vrot.lane.b32.xlu0 %v1055_v34, %s1745_s10  ;;  %v300_v62 = vadd.f32 %v298_v47, %v291_v30  ;;  %v1125_v34 = vmul.f32 %v2150_v57, %v1124_v15  ;;  %s1527_s28 = sld [smem:[#allocation2 + $0x1f]] }
  0xc7   : > { %v638_v45 = vpop.permute.xlu1 %637  ;;  %625 = vrot.lane.b32.xlu2 %v620_v39, %s1745_s10  ;;  %v640_v55 = vpop.permute.xlu0 %639 }
  0xc8   : > { %v643_v33 = vadd.f32 %v638_v45, %v615_v43  ;;  %v644_v60 = vadd.f32 %v640_v55, %v616_v27  ;;  %v690_v45 = vmul.f32 %v1929_v40, %v688_v37  ;;  %v689_v55 = vmul.f32 %v1935_v44, %v688_v37 }
  0xc9   : > { %v315_v7 = vpop.permute.xlu2 %314 }
  0xca   : > { %v658_v63 = vadd.f32 %v656_v49, %v644_v60  ;;  %v320_v10 = vadd.f32 %v315_v7, %v300_v62  ;;  %v657_v14 = vadd.f32 %v655_v1, %v643_v33  ;;  %v661_v49 = vmul.f32 %v1935_v44, %v660_v51 }
  0xcb   : > { %v795_v7 = vstv %s2176_s29  ;;  %v759_v51 = vstv %s2181_s11  ;;  %s2266_s11 = sld [smem:[#allocation2 + $0x22]] }
  0xcc   : > { %v686_v5 = vadd.f32 %v2085_v54, %v658_v63  ;;  %v726_v54 = vmul.f32 %v1943_v48, %v725_v23  ;;  %v797_v1 = vmul.f32 %v1961_v59, %v795_v7  ;;  %s1518_s29 = sld [smem:[#allocation2 + $0x3f]] }
  0xcd   : > { %623 = vrot.lane.b32.xlu1 %v619_v56, %s1745_s10  ;;  %1103 = vrot.lane.b32.xlu0 %v1098_v61, %s1746_s12  ;;  %v731_v56 = vstv %s1495_s9  ;;  %s1529_s9 = sld [smem:[#allocation2 + $0x20]] }
  0xce   : > { %v732_v63 = vmul.f32 %v1943_v48, %v731_v56 }
  0xcf   : > { %v710_v9 = vpop.permute.xlu1 %709  ;;  %1101 = vrot.lane.b32.xlu2 %v1097_v2, %s1746_s12  ;;  %v680_v18 = vpop.permute.xlu0 %679 }
  0xd0   : > { %v714_v13 = vadd.f32 %v710_v9, %v686_v5  ;;  %v685_v25 = vadd.f32 %v680_v18, %v657_v14  ;;  %v733_v5 = vmul.f32 %v1947_v50, %v731_v56  ;;  %v367_v14 = vstv %s2190_s15  ;;  %s2274_s15 = sld [smem:[#allocation2 + $0x9]] }
  0xd1   : > { %v343_v27 = vpop.permute.xlu2 %342 }
  0xd2   : > { %v2168_v28 = vadd.f32 %v343_v27, %v320_v10  ;;  %v713_v29 = vadd.f32 %v2103_v12, %v685_v25  ;;  %v729_v43 = vadd.f32 %v727_v22, %v714_v13  ;;  %v761_v10 = vmul.f32 %v1947_v50, %v759_v51 }
  0xd3   : > { %v760_v27 = vmul.f32 %v1943_v48, %v759_v51 }
  0xd4   : > { %v728_v36 = vadd.f32 %v726_v54, %v713_v29 }
  0xd5   : > { %667 = vrot.lane.b32.xlu1 %v662_v19, %s1746_s12  ;;  %1131 = vrot.lane.b32.xlu0 %v1126_v6, %s1745_s10  ;;  %v369_v19 = vmul.f32 %v367_v14, %v1865_v3  ;;  %v829_v3 = vstv %s1505_s14  ;;  %s2283_s14 = sld [smem:[#allocation2 + $0x3c]] }
  0xd7   : > { %v751_v39 = vpop.permute.xlu1 %750  ;;  %1129 = vrot.lane.b32.xlu2 %v1125_v34, %s1745_s10  ;;  %v753_v12 = vpop.permute.xlu0 %752 }
  0xd8   : > { %v756_v42 = vadd.f32 %v751_v39, %v728_v36  ;;  %v757_v47 = vadd.f32 %v753_v12, %v729_v43  ;;  %v368_v43 = vmul.f32 %v367_v14, %v1878_v11 }
  0xd9   : > { %v387_v33 = vpop.permute.xlu2 %386 }
  0xda   : > { %v785_v53 = vadd.f32 %v2124_v32, %v757_v47  ;;  %v299_v32 = vmul.f32 %v297_v41, %v1861_v0  ;;  %v801_v41 = vstv %s2186_s13  ;;  %v871_v47 = vstv %s2217_s16  ;;  %s2271_s13 = sld [smem:[#allocation2 + $0x23]] }
  0xdb   : > { %v802_v29 = vmul.f32 %v1971_v4, %v801_v41  ;;  %s1526_s16 = sld [smem:[#allocation2 + $0x42]] }
  0xdc   : > { %v301_v9 = vadd.f32 %v299_v32, %v291_v30  ;;  %v799_v0 = vadd.f32 %v797_v1, %v785_v53  ;;  %v803_v30 = vmul.f32 %v1961_v59, %v801_v41  ;;  %v899_v53 = vstv %s1513_s17 }
  0xdd   : > { %695 = vrot.lane.b32.xlu1 %v690_v45, %s1745_s10  ;;  %665 = vrot.lane.b32.xlu0 %v661_v49, %s1746_s12  ;;  %v831_v45 = vmul.f32 %v1961_v59, %v829_v3  ;;  %v370_v49 = vadd.f32 %v368_v43, %v2168_v28  ;;  %v900_v28 = vmul.f32 %v1995_v21, %v899_v53 }
  0xdf   : > { %v779_v60 = vpop.permute.xlu1 %778  ;;  %693 = vrot.lane.b32.xlu2 %v689_v55, %s1745_s10  ;;  %v317_v62 = vpop.permute.xlu0 %316 }
  0xe0   : > { %v2192_v61 = vadd.f32 %v779_v60, %v756_v42  ;;  %v321_v15 = vadd.f32 %v317_v62, %v301_v9  ;;  %v830_v42 = vmul.f32 %v1971_v4, %v829_v3  ;;  %v901_v60 = vmul.f32 %v1990_v17, %v899_v53 }
  0xe1   : > { %v415_v2 = vpop.permute.xlu2 %414  ;;  %v872_v62 = vmul.f32 %v1995_v21, %v871_v47  ;;  %v796_v53 = vmul.f32 %v1971_v4, %v795_v7 }
  0xe5   : > { %736 = vrot.lane.b32.xlu1 %v732_v63, %s1746_s12  ;;  %738 = vrot.lane.b32.xlu0 %v733_v5, %s1746_s12  ;;  %v942_v63 = vstv %s1519_s19  ;;  %s1477_s19 = sld [smem:[#allocation2 + $0xc]] }
  0xe6   : > { %v943_v9 = vmul.f32 %v2043_v58, %v942_v63  ;;  %v944_v41 = vmul.f32 %v2028_v46, %v942_v63 }
  0xe7   : > { %v823_v13 = vpop.permute.xlu1 %822  ;;  %766 = vrot.lane.b32.xlu2 %v761_v10, %s1745_s10  ;;  %v345_v23 = vpop.permute.xlu0 %344 }
  0xe8   : > { %v827_v18 = vadd.f32 %v823_v13, %v799_v0  ;;  %v349_v25 = vadd.f32 %v345_v23, %v321_v15  ;;  %v970_v13 = vstv %s1521_s26  ;;  %s1485_s26 = sld [smem:[#allocation2 + $0xf]] }
  0xe9   : > { %v2214_v54 = vpop.permute.xlu2 %890  ;;  %v972_v14 = vmul.f32 %v2028_v46, %v970_v13 }
  0xea   : > { %v371_v6 = vadd.f32 %v369_v19, %v349_v25 }
  0xec   : > { %v391_v22 = vadd.f32 %v387_v33, %v371_v6  ;;  %v873_v33 = vmul.f32 %v1990_v17, %v871_v47 }
  0xed   : > { %808 = vrot.lane.b32.xlu1 %v803_v30, %s1746_s12  ;;  %764 = vrot.lane.b32.xlu0 %v760_v27, %s1745_s10  ;;  %v971_v27 = vmul.f32 %v2043_v58, %v970_v13  ;;  %v865_v13 = vstv %s2283_s14  ;;  %s1525_s14 = sld [smem:[#allocation2 + $0x1e]] }
  0xee   : > { %v419_v36 = vadd.f32 %v415_v2, %v391_v22  ;;  %v437_v2 = vstv %s2237_s20  ;;  %v1040_v22 = vstv %s1529_s9  ;;  %s1493_s9 = sld [smem:[#allocation2 + $0x12]] }
  0xef   : > { %v851_v34 = vpop.permute.xlu1 %850  ;;  %806 = vrot.lane.b32.xlu2 %v802_v29, %s1746_s12  ;;  %v2225_v39 = vpop.permute.xlu0 %820  ;;  %v439_v10 = vmul.f32 %v437_v2, %v1887_v16  ;;  %v438_v6 = vmul.f32 %v437_v2, %v1893_v20  ;;  %v1042_v47 = vmul.f32 %v2073_v38, %v1040_v22 }
  0xf0   : > { %v2222_v37 = vadd.f32 %v851_v34, %v827_v18  ;;  %v1012_v18 = vstv %s1527_s28  ;;  %s1747_s28 = smov 16  }
  0xf1   : > { %v2229_v12 = vpop.permute.xlu2 %918  ;;  %v441_v15 = vadd.f32 %v439_v10, %v419_v36  ;;  %v1014_v16 = vmul.f32 %v2073_v38, %v1012_v18  ;;  %v1013_v29 = vmul.f32 %v2098_v8, %v1012_v18 }
  0xf5   : > { %834 = vrot.lane.b32.xlu1 %v830_v42, %s1745_s10  ;;  %836 = vrot.lane.b32.xlu0 %v831_v45, %s1745_s10  ;;  %v1041_v42 = vmul.f32 %v2098_v8, %v1040_v22 }
  0xf7   : > { %v385_v55 = vpop.permute.xlu1 %384  ;;  %878 = vrot.lane.b32.xlu2 %v873_v33, %s1746_s12  ;;  %v2240_v56 = vpop.permute.xlu0 %848  ;;  %v1082_v33 = vstv %s2266_s11  ;;  %s1501_s11 = sld [smem:[#allocation2 + $0x15]] }
  0xf8   : > { %v390_v11 = vadd.f32 %v385_v55, %v370_v49  ;;  %v1084_v49 = vmul.f32 %v2141_v52, %v1082_v33  ;;  %v1110_v55 = vstv %s2271_s13  ;;  %s1509_s13 = sld [smem:[#allocation2 + $0x18]] }
  0xf9   : > { %v2243_v32 = vpop.permute.xlu2 %963  ;;  %v1112_v63 = vmul.f32 %v2141_v52, %v1110_v55 }
  0xfd   : > { %906 = vrot.lane.b32.xlu1 %v901_v60, %s1745_s10  ;;  %876 = vrot.lane.b32.xlu0 %v872_v62, %s1746_s12  ;;  %v508_v60 = vstv %s2274_s15  ;;  %s1517_s15 = sld [smem:[#allocation2 + $0x1b]] }
  0xfe   : > { %v509_v62 = vmul.f32 %v1901_v24, %v508_v60  ;;  %v866_v24 = vmul.f32 %v1995_v21, %v865_v13 }
  0xff   : > { %v413_v1 = vpop.permute.xlu1 %412  ;;  %904 = vrot.lane.b32.xlu2 %v900_v28, %s1745_s10  ;;  %v2251_v51 = vpop.permute.xlu0 %892 }
 0x100   : > { %v418_v5 = vadd.f32 %v413_v1, %v390_v11  ;;  %v798_v1 = vadd.f32 %v796_v53, %v2192_v61 }
 0x101   : > { %v2255_v0 = vpop.permute.xlu2 %991 }
 0x102   : > { %v440_v36 = vadd.f32 %v438_v6, %v418_v5  ;;  %v1083_v5 = vmul.f32 %v2150_v57, %v1082_v33  ;;  %v936_v6 = vstv %s1518_s29  ;;  %v1006_v33 = vstv %s1526_s16  ;;  %s1533_s29 = sld [smem:[#allocation2 + $0x21]] }
 0x103   : > { %v1007_v53 = vmul.f32 %v2098_v8, %v1006_v33 }
 0x105   : > { %947 = vrot.lane.b32.xlu1 %v943_v9, %s1746_s12  ;;  %949 = vrot.lane.b32.xlu0 %v944_v41, %s1746_s12  ;;  %v826_v9 = vadd.f32 %v2225_v39, %v798_v1  ;;  %v1111_v41 = vmul.f32 %v2150_v57, %v1110_v55 }
 0x107   : > { %v457_v19 = vpop.permute.xlu1 %456  ;;  %977 = vrot.lane.b32.xlu2 %v972_v14, %s1745_s10  ;;  %v2262_v30 = vpop.permute.xlu0 %920  ;;  %v854_v14 = vadd.f32 %v2240_v56, %v826_v9 }
 0x108   : > { %v461_v23 = vadd.f32 %v457_v19, %v441_v15 }
 0x109   : > { %v526_v25 = vpop.permute.xlu2 %525  ;;  %v868_v19 = vadd.f32 %v866_v24, %v854_v14  ;;  %v510_v24 = vmul.f32 %v1905_v26, %v508_v60 }
 0x10d   : > { %1019 = vrot.lane.b32.xlu1 %v1014_v16, %s1746_s12  ;;  %975 = vrot.lane.b32.xlu0 %v971_v27, %s1745_s10  ;;  %v896_v16 = vadd.f32 %v2214_v54, %v868_v19  ;;  %v867_v27 = vmul.f32 %v1990_v17, %v865_v13 }
 0x10f   : > { %v485_v3 = vpop.permute.xlu1 %484  ;;  %1017 = vrot.lane.b32.xlu2 %v1013_v29, %s1746_s12  ;;  %v455_v20 = vpop.permute.xlu0 %454  ;;  %v869_v22 = vadd.f32 %v867_v27, %v2222_v37 }
 0x110   : > { %v2276_v34 = vadd.f32 %v485_v3, %v461_v23  ;;  %v460_v43 = vadd.f32 %v455_v20, %v440_v36  ;;  %v937_v3 = vmul.f32 %v2043_v58, %v936_v6  ;;  %v938_v20 = vmul.f32 %v2028_v46, %v936_v6 }
 0x111   : > { %v554_v45 = vpop.permute.xlu2 %553  ;;  %v897_v36 = vadd.f32 %v2251_v51, %v869_v22  ;;  %v578_v22 = vstv %s1477_s19 }
 0x112   : > { %v512_v27 = vadd.f32 %v510_v24, %v2276_v34  ;;  %v580_v26 = vmul.f32 %v1913_v31, %v578_v22  ;;  %v648_v31 = vstv %s1485_s26 }
 0x115   : > { %1045 = vrot.lane.b32.xlu1 %v1041_v42, %s1745_s10  ;;  %1047 = vrot.lane.b32.xlu0 %v1042_v47, %s1745_s10  ;;  %v925_v42 = vadd.f32 %v2262_v30, %v897_v36 }
 0x117   : > { %v962_v11 = vpop.permute.xlu1 %961  ;;  %1089 = vrot.lane.b32.xlu2 %v1084_v49, %s1746_s12  ;;  %v483_v28 = vpop.permute.xlu0 %482  ;;  %v940_v49 = vadd.f32 %v938_v20, %v925_v42 }
 0x118   : > { %v488_v2 = vadd.f32 %v483_v28, %v460_v43 }
 0x119   : > { %v2299_v7 = vpop.permute.xlu2 %597  ;;  %v968_v51 = vadd.f32 %v2243_v32, %v940_v49 }
 0x11a   : > { %v511_v10 = vadd.f32 %v509_v62, %v488_v2 }
 0x11c   : > { %v531_v15 = vadd.f32 %v526_v25, %v511_v10  ;;  %v924_v25 = vadd.f32 %v2229_v12, %v896_v16 }
 0x11d   : > { %1117 = vrot.lane.b32.xlu1 %v1112_v63, %s1745_s10  ;;  %1087 = vrot.lane.b32.xlu0 %v1083_v5, %s1746_s12  ;;  %s277_s12 = sand.u32 1, %s1733_s22   ;;  %v1008_v5 = vmul.f32 %v2073_v38, %v1006_v33 }
 0x11e   : > { %v2308_v18 = vadd.f32 %v554_v45, %v531_v15  ;;  %v939_v43 = vadd.f32 %v937_v3, %v924_v25  ;;  %s1445_s17 = sshll.u32 %s277_s12, 5 }
 0x11f   : > { %v990_v61 = vpop.permute.xlu1 %989  ;;  %1115 = vrot.lane.b32.xlu2 %v1111_v41, %s1745_s10  ;;  %v528_v39 = vpop.permute.xlu0 %527  ;;  %s2321_s10 = sld [smem:[#allocation2 + $0x45]]  ;;  %s2335_s20 = scalar_lea.vmem [#allocation7], %s1445_s17 }
 0x120   : > { %v967_v47 = vadd.f32 %v962_v11, %v939_v43  ;;  %v996_v11 = vadd.f32 %v2255_v0, %v968_v51  ;;  %v532_v6 = vadd.f32 %v528_v39, %v512_v27  ;;  %s1325_s16 = sshll.u32 %s2335_s20, 4  ;;  %s1326_s16 = int_to_ptr.vmem [resolvable:$true] %s1325_s16 }
 0x121   : > { %v2311_v23 = vpop.permute.xlu2 %625 }
 0x122   : > { %v995_v37 = vadd.f32 %v990_v61, %v967_v47  ;;  %v1010_v41 = vadd.f32 %v1008_v5, %v996_v11 }
 0x124   : > { %v1009_v55 = vadd.f32 %v1007_v53, %v995_v37  ;;  %v650_v37 = vmul.f32 %v1929_v40, %v648_v31 }
 0x125   : > { %v1076_v30 = vstv %s2321_s10  ;;  %s1563_s10 = sshll.u32 %s1806_s25, 5  ;;  %s1691_s25 = scalar_lea.hbm %s2464_s6, 64 }
 0x126   : > { %v1077_v63 = vmul.f32 %v2150_v57, %v1076_v30  ;;  %v1078_v0 = vmul.f32 %v2141_v52, %v1076_v30  ;;  %s1324_s26 = scalar_lea.hbm %s2464_s6, %s1563_s10 }
 0x127   : > { %v1034_v29 = vpop.permute.xlu1 %1033  ;;  %v556_v56 = vpop.permute.xlu0 %555 }
 0x128   : > { %v1038_v14 = vadd.f32 %v1034_v29, %v1010_v41  ;;  %v560_v60 = vadd.f32 %v556_v56, %v532_v6  ;;  %v789_v41 = vstv %s1501_s11 }
 0x129   : > { %v1102_v45 = vpop.permute.xlu2 %1101  ;;  %v791_v24 = vmul.f32 %v1961_v59, %v789_v41 }
 0x12a   : > { %v582_v43 = vadd.f32 %v580_v26, %v560_v60 }
 0x12c   : > { %v602_v39 = vadd.f32 %v2299_v7, %v582_v43 }
 0x12f   : > { %v1062_v54 = vpop.permute.xlu1 %1061  ;;  %v1032_v12 = vpop.permute.xlu0 %1031 }
 0x130   : > { %v1037_v28 = vadd.f32 %v1032_v12, %v1009_v55  ;;  %v1066_v16 = vadd.f32 %v1062_v54, %v1038_v14  ;;  %v579_v54 = vmul.f32 %v1920_v35, %v578_v22  ;;  %v630_v12 = vadd.f32 %v2311_v23, %v602_v39 }
 0x131   : > { %v1130_v2 = vpop.permute.xlu2 %1129  ;;  %v649_v35 = vmul.f32 %v1935_v44, %v648_v31 }
 0x132   : > { %v1080_v25 = vadd.f32 %v1078_v0, %v1066_v16  ;;  %v581_v47 = vadd.f32 %v579_v54, %v2308_v18  ;;  %v652_v55 = vadd.f32 %v650_v37, %v630_v12  ;;  %v859_v0 = vstv %s1509_s13 }
 0x133   : > { %v861_v22 = vmul.f32 %v1990_v17, %v859_v0  ;;  %v860_v60 = vmul.f32 %v1995_v21, %v859_v0  ;;  %v1000_v12 = vstv %s1525_s14  ;;  %v1154_v0 = vld [vmem:[%s2461_s3 + $0x8] sm:$0xff] }
 0x137   : > { %v596_v62 = vpop.permute.xlu1 %595  ;;  %v1060_v1 = vpop.permute.xlu0 %1059 }
 0x138   : > { %v1065_v9 = vadd.f32 %v1060_v1, %v1037_v28  ;;  %v601_v33 = vadd.f32 %v596_v62, %v581_v47  ;;  %v719_v28 = vstv %s1493_s9  ;;  %s1310_s9 = scalar_lea.sflag [#allocation3], %s277_s12 }
 0x139   : > { %v694_v19 = vpop.permute.xlu2 %693  ;;  %v720_v23 = vmul.f32 %v1943_v48, %v719_v28 }
 0x13a   : > { %v1079_v10 = vadd.f32 %v1077_v63, %v1065_v9 }
 0x13c   : > { %v1107_v32 = vadd.f32 %v1102_v45, %v1079_v10 }
 0x13e   : > { %v1135_v15 = vadd.f32 %v1130_v2, %v1107_v32  ;;  %v721_v2 = vmul.f32 %v1947_v50, %v719_v28 }
 0x13f   : > { %v624_v13 = vpop.permute.xlu1 %623  ;;  %v1104_v61 = vpop.permute.xlu0 %1103 }
 0x140   : > { %1539 = vst.msk [vmem:[%s2335_s20 + $0x10] sm:$0xff] %vm1137_vm0, %v1135_v15  ;;  %v1108_v29 = vadd.f32 %v1104_v61, %v1080_v25  ;;  %v629_v49 = vadd.f32 %v624_v13, %v601_v33 }
 0x141   : > { %v767_v42 = vpop.permute.xlu2 %766 }
 0x142   : > { %v651_v30 = vadd.f32 %v649_v35, %v629_v49 }
 0x147   : > { %v668_v3 = vpop.permute.xlu1 %667  ;;  %v1132_v36 = vpop.permute.xlu0 %1131 }
 0x148   : > { %v1136_v20 = vadd.f32 %v1132_v36, %v1108_v29  ;;  %v672_v7 = vadd.f32 %v668_v3, %v652_v55 }
 0x149   : > { %v807_v53 = vpop.permute.xlu2 %806 }
 0x14a   : > { %v1636_v45 = vpack.i.bf16 %v1135_v15, %v1136_v20  ;;  %1540 = vst.msk [vmem:[%s2335_s20 + $0x18] sm:$0xff] %vm1137_vm0, %v1136_v20  ;;  %v790_v15 = vmul.f32 %v1971_v4, %v789_v41  ;;  %v930_v20 = vstv %s1517_s15 }
 0x14b   : > { %v931_v17 = vmul.f32 %v2043_v58, %v930_v20 }
 0x14c   : > { %1637 = vrot.lane.b32.xlu0 %v1636_v45, %s1747_s28  ;;  %s1327_s28 = sshll.u32 %s1324_s26, 4  ;;  %s1328_s28 = int_to_ptr.hbm [resolvable:$true] %s1327_s28 }
 0x14d   : > { %s1685_s11 = sshra.s32 %s1328_s28, 4  ;;  %s1686_s11 = int_to_ptr.hbm [resolvable:$true] %s1685_s11 }
 0x14e   : > { %s1687_s13 = scalar_lea.hbm %s1686_s11, 32  ;;  %p1692_p3 = scmp.lt.s32.totalorder %s1686_s11, %s2464_s6 }
 0x14f   : > { %v696_v34 = vpop.permute.xlu1 %695  ;;  %v666_v56 = vpop.permute.xlu0 %665  ;;  %p1688_p0 = scmp.ne.s32.totalorder %s1686_s11, %s1687_s13  ;;  %p1693_p4 = scmp.lt.s32.totalorder %s1691_s25, %s1687_s13 }
 0x150   : > { %v671_v1 = vadd.f32 %v666_v56, %v651_v30  ;;  %v700_v18 = vadd.f32 %v696_v34, %v672_v7  ;;  %v932_v34 = vmul.f32 %v2028_v46, %v930_v20  ;;  %v1001_v30 = vmul.f32 %v2098_v8, %v1000_v12 }
 0x151   : > { %v879_v5 = vpop.permute.xlu2 %878  ;;  %v1070_v46 = vstv %s1533_s29  ;;  %p1689_p1 = pnand %p1688_p0, %p1823_p5  ;;  %p1694_p7 = por %p1693_p4, %p1692_p3 }
 0x152   : > { %v699_v62 = vadd.f32 %v694_v19, %v671_v1  ;;  %v723_v40 = vadd.f32 %v721_v2, %v700_v18  ;;  %v1072_v18 = vmul.f32 %v2141_v52, %v1070_v46 }
 0x153   : > { %p1690_p2 = pneg %p1689_p1 }
 0x154   : > { %v722_v44 = vadd.f32 %v720_v23, %v699_v62 }
 0x155   : > { %p1695_p8 = pnand %p1694_p7, %p1690_p2 }
 0x157   : > { %v737_v51 = vpop.permute.xlu1 %736  ;;  %v739_v63 = vpop.permute.xlu0 %738 }
 0x158   : > { %v743_v10 = vadd.f32 %v739_v63, %v723_v40  ;;  %v742_v32 = vadd.f32 %v737_v51, %v722_v44  ;;  %v1002_v51 = vmul.f32 %v2073_v38, %v1000_v12  ;;  %v1071_v38 = vmul.f32 %v2150_v57, %v1070_v46  ;;  %v1153_v57 = vld [vmem:[%s2461_s3] sm:$0xff] }
 0x159   : > { %v905_v19 = vpop.permute.xlu2 %904 }
 0x15a   : > { %v771_v13 = vadd.f32 %v767_v42, %v743_v10 }
 0x15c   : > { %v793_v16 = vadd.f32 %v791_v24, %v771_v13 }
 0x15f   : > { %v809_v11 = vpop.permute.xlu1 %808  ;;  %v765_v9 = vpop.permute.xlu0 %764 }
 0x160   : > { %v770_v14 = vadd.f32 %v765_v9, %v742_v32  ;;  %v813_v27 = vadd.f32 %v809_v11, %v793_v16  ;;  %v1228_v16 = vld [vmem:[%s2462_s4 + $0x10] sm:$0xff] }
 0x161   : > { %v978_v36 = vpop.permute.xlu2 %977 }
 0x162   : > { %v792_v48 = vadd.f32 %v790_v15, %v770_v14 }
 0x164   : > { %v812_v6 = vadd.f32 %v807_v53, %v792_v48  ;;  %v1227_v48 = vld [vmem:[%s2462_s4 + $0x8] sm:$0xff] }
 0x167   : > { %v835_v61 = vpop.permute.xlu1 %834  ;;  %v837_v50 = vpop.permute.xlu0 %836 }
 0x168   : > { %v841_v25 = vadd.f32 %v837_v50, %v813_v27  ;;  %v840_v26 = vadd.f32 %v835_v61, %v812_v6  ;;  %v1158_v50 = vld [vmem:[%s2461_s3 + $0x28] sm:$0xff]  ;;  %v1159_v27 = vld [vmem:[%s2461_s3 + $0x30] sm:$0xff] }
 0x169   : > { %v1018_v56 = vpop.permute.xlu2 %1017  ;;  %v1155_v6 = vld [vmem:[%s2461_s3 + $0x10] sm:$0xff] }
 0x16a   : > { %v863_v29 = vadd.f32 %v861_v22, %v841_v25  ;;  %v862_v4 = vadd.f32 %v860_v60, %v840_v26  ;;  %v1160_v25 = vld [vmem:[%s2461_s3 + $0x38] sm:$0xff]  ;;  %v1226_v26 = vld [vmem:[%s2462_s4] sm:$0xff] }
 0x16b   : > { %v1156_v22 = vld [vmem:[%s2461_s3 + $0x18] sm:$0xff] }
 0x16c   : > { %v883_v42 = vadd.f32 %v879_v5, %v863_v29 }
 0x16f   : > { %v907_v3 = vpop.permute.xlu1 %906  ;;  %v877_v59 = vpop.permute.xlu0 %876 }
 0x170   : > { %v882_v43 = vadd.f32 %v877_v59, %v862_v4  ;;  %v911_v45 = vadd.f32 %v907_v3, %v883_v42  ;;  %v1157_v3 = vld [vmem:[%s2461_s3 + $0x20] sm:$0xff] }
 0x171   : > { %v1090_v58 = vpop.permute.xlu2 %1089 }
 0x172   : > { %v910_v47 = vadd.f32 %v905_v19, %v882_v43  ;;  %v934_v31 = vadd.f32 %v932_v34, %v911_v45  ;;  %v1229_v19 = vld [vmem:[%s2462_s4 + $0x18] sm:$0xff] }
 0x173   : > { %1267 = vmatpush.msra.mxu1 %v1229_v19  ;;  %1566 = vmatpush.msra.mxu2 %v1229_v19 }
 0x174   : > { %v933_v21 = vadd.f32 %v931_v17, %v910_v47 }
 0x175   : > { %1268 = vmatpush.msra.mxu1 %v1228_v16  ;;  %1567 = vmatpush.msra.mxu2 %v1228_v16 }
 0x177   : > { %v948_v54 = vpop.permute.xlu1 %947  ;;  %v950_v39 = vpop.permute.xlu0 %949  ;;  %1269 = vmatpush.msra.mxu1 %v1227_v48  ;;  %1568 = vmatpush.msra.mxu2 %v1227_v48 }
 0x178   : > { %v954_v33 = vadd.f32 %v950_v39, %v934_v31  ;;  %v953_v37 = vadd.f32 %v948_v54, %v933_v21 }
 0x179   : > { %v1116_v41 = vpop.permute.xlu2 %1115  ;;  %1270 = vmatpush.msra.mxu1 %v1226_v26  ;;  %1569 = vmatpush.msra.mxu2 %v1226_v26 }
 0x17a   : > { %v982_v53 = vadd.f32 %v978_v36, %v954_v33 }
 0x17c   : > { %v1004_v28 = vadd.f32 %v1002_v51, %v982_v53 }
 0x17f   : > { %v1020_v49 = vpop.permute.xlu1 %1019  ;;  %v976_v35 = vpop.permute.xlu0 %975 }
 0x180   : > { %v981_v55 = vadd.f32 %v976_v35, %v953_v37  ;;  %v1024_v1 = vadd.f32 %v1020_v49, %v1004_v28 }
 0x182   : > { %v1003_v63 = vadd.f32 %v1001_v30, %v981_v55 }
 0x184   : > { %v1023_v62 = vadd.f32 %v1018_v56, %v1003_v63 }
 0x187   : > { %v1046_v7 = vpop.permute.xlu1 %1045  ;;  %v1048_v2 = vpop.permute.xlu0 %1047 }
 0x188   : > { %v1052_v23 = vadd.f32 %v1048_v2, %v1024_v1  ;;  %v1051_v11 = vadd.f32 %v1046_v7, %v1023_v62 }
 0x18a   : > { %v1074_v5 = vadd.f32 %v1072_v18, %v1052_v23  ;;  %v1073_v44 = vadd.f32 %v1071_v38, %v1051_v11 }
 0x18c   : > { %v1094_v40 = vadd.f32 %v1090_v58, %v1074_v5 }
 0x18f   : > { %v1118_v9 = vpop.permute.xlu1 %1117  ;;  %v1088_v10 = vpop.permute.xlu0 %1087 }
 0x190   : > { %v1122_v8 = vadd.f32 %v1118_v9, %v1094_v40  ;;  %v1093_v32 = vadd.f32 %v1088_v10, %v1073_v44 }
 0x192   : > { %1139 = vst.msk [vmem:[%s2335_s20 + $0x8] sm:$0xff] %vm1137_vm0, %v1122_v8  ;;  %v1121_v13 = vadd.f32 %v1116_v41, %v1093_v32 }
 0x194   : > { %1138 = vst.msk [vmem:[%s2335_s20] sm:$0xff] %vm1137_vm0, %v1121_v13 }
 0x1be   : > { %v1638_v52 = vpop.permute.xlu0 %1637 }
 0x1bf   : > { %v1640_v24 = vunpack.i.h.bf16 %v1638_v52  ;;  %v1639_v14 = vunpack.i.l.bf16 %v1638_v52 }
 0x1c1   : > { %v1152_v15 = vsel %vm1137_vm0, %v1122_v8, %v1639_v14  ;;  %v1151_v61 = vsel %vm1137_vm0, %v1121_v13, %v1640_v24 }
 0x1c2   : > { %1199 = vmatpush.msra.mxu0 %v1152_v15  ;;  %1564 = vmatpush.msra.mxu3 %v1152_v15 }
 0x1c4   : > { %1200 = vmatpush.msra.mxu0 %v1151_v61  ;;  %1565 = vmatpush.msra.mxu3 %v1151_v61 }
 0x1c5   : > { %1541 = vmatmul.msk.f32.vlgmr.msra.gmra.mxu0 %vm1137_vm0, %v1153_v57  ;;  %1546 = vmatmul.msk.f32.vlgmr.msra.gmra.mxu3 %vm1137_vm0, %v1158_v50 }
 0x1cd   : > { %1542 = vmatmul.msk.f32.gmra.mxu0 %vm1137_vm0, %v1154_v0  ;;  %1547 = vmatmul.msk.f32.gmra.mxu3 %vm1137_vm0, %v1159_v27 }
 0x1d5   : > { %1543 = vmatmul.msk.f32.gmra.mxu0 %vm1137_vm0, %v1155_v6  ;;  %1548 = vmatmul.msk.f32.gmra.mxu3 %vm1137_vm0, %v1160_v25 }
 0x1dd   : > { %1544 = vmatmul.msk.f32.gmra.mxu0 %vm1137_vm0, %v1156_v22 }
 0x1e5   : > { %1545 = vmatmul.msk.f32.gmra.mxu0 %vm1137_vm0, %v1157_v3 }
 0x242   : > { %v1202_v60 = vpop.f32.mrf.mxu0 }
 0x243   : > { %1549 = vmatmul.msk.f32.vlgmr.msra.gmra.mxu1 %vm1230_vm1, %v1202_v60 }
 0x248   : > { %v1217_v20 = vpop.f32.mrf.mxu3 }
 0x24a   : > { %v1205_v59 = vpop.f32.mrf.mxu0 }
 0x24b   : > { %1550 = vmatmul.msk.f32.gmra.mxu1 %vm1230_vm1, %v1205_v59 }
 0x250   : > { %v1220_v42 = vpop.f32.mrf.mxu3 }
 0x252   : > { %v1208_v29 = vpop.f32.mrf.mxu0 }
 0x253   : > { %1551 = vmatmul.msk.f32.gmra.mxu1 %vm1230_vm1, %v1208_v29 }
 0x258   : > { %v1223_v43 = vpop.f32.mrf.mxu3 }
 0x25a   : > { %v1211_v36 = vpop.f32.mrf.mxu0 }
 0x25b   : > { %1552 = vmatmul.msk.f32.gmra.mxu1 %vm1230_vm1, %v1211_v36 }
 0x262   : > { %v1214_v4 = vpop.f32.mrf.mxu0 }
 0x263   : > { %1553 = vmatmul.msk.f32.vlgmr.msra.gmra.mxu2 %vm1230_vm1, %v1214_v4 }
 0x26b   : > { %1554 = vmatmul.msk.f32.gmra.mxu2 %vm1230_vm1, %v1217_v20 }
 0x273   : > { %1555 = vmatmul.msk.f32.gmra.mxu2 %vm1230_vm1, %v1220_v42 }
 0x27b   : > { %1556 = vmatmul.msk.f32.gmra.mxu2 %vm1230_vm1, %v1223_v43 }
 0x27c   : > { %1698 = shalt.err (!%p1695_p8)
}
 0x27d   : > { %s1748_s12 = smov 128   ;;  %s1749_s10 = smov 8  }
 0x27e   : > { %1579 = dma.vmem_to_hbm [thread:$0]  (%p1823_p5), %s1326_s16, 512, %s1328_s28, %s1310_s9, %s1748_s12, %s1748_s12, %s1749_s10  }
 0x27f   : > { %s1562_s17 = sshll.u32 %s1852_s18, 6 }
 0x280   : > { %s289_s20 = scalar_lea.vmem %s2463_s5, %s1562_s17 }
 0x2c0   : > { %v1272_v54 = vpop.f32.mrf.mxu1 }
 0x2c1   : > { %1296 = vst [vmem:[%s289_s20] sm:$0xff] %v1272_v54 }
 0x2c8   : > { %v1275_v45 = vpop.f32.mrf.mxu1 }
 0x2c9   : > { %1297 = vst [vmem:[%s289_s20 + $0x8] sm:$0xff] %v1275_v45 }
 0x2d0   : > { %v1278_v34 = vpop.f32.mrf.mxu1 }
 0x2d1   : > { %1298 = vst [vmem:[%s289_s20 + $0x10] sm:$0xff] %v1278_v34 }
 0x2d8   : > { %v1281_v39 = vpop.f32.mrf.mxu1 }
 0x2d9   : > { %1299 = vst [vmem:[%s289_s20 + $0x18] sm:$0xff] %v1281_v39 }
 0x2e6   : > { %v1284_v47 = vpop.f32.mrf.mxu2 }
 0x2e7   : > { %1300 = vst [vmem:[%s289_s20 + $0x20] sm:$0xff] %v1284_v47 }
 0x2ee   : > { %v1287_v17 = vpop.f32.mrf.mxu2 }
 0x2ef   : > { %1301 = vst [vmem:[%s289_s20 + $0x28] sm:$0xff] %v1287_v17 }
 0x2f6   : > { %v1290_v31 = vpop.f32.mrf.mxu2 }
 0x2f7   : > { %1302 = vst [vmem:[%s289_s20 + $0x30] sm:$0xff] %v1290_v31 }
 0x2fe   : > { %v1293_v56 = vpop.f32.mrf.mxu2 }
 0x2ff   : > { %1303 = vst [vmem:[%s289_s20 + $0x38] sm:$0xff] %v1293_v56 }
 0x300 PF: > { %p1596_p5 = scmp.ge.s32.totalorder %s1741_s24, 2  ;;  %s1350_s7 = sand.u32 1, %s1729_s21  }
 0x301   : > { %s1351_s18 = scalar_lea.sflag [#allocation3], %s1350_s7 }
 0x302   : > { %p1589_p9 = pnand %p1596_p5, %p1827_p6 }
 0x304   : > { %p1590_p10 = pneg %p1589_p9 }
 0x306   : > { %1724 = dma.done.wait (%p1590_p10), %s1351_s18, 512  }
 0x307   : > { %1726 = vsyncadd (%p1590_p10), %s1351_s18, 4294966784  ;;  %p19_p11 = scmp.ge.s32.totalorder %s1810_s27, 4   ;;  %s2467_s21 = smov %s1733_s22 }
 0x308   : > { %s2468_s22 = smov %s1737_s23  ;;  %s2469_s23 = smov %s1821_s30 }
 0x309   : > { %s2470_s24 = smov %s1810_s27  ;;  %21 = sbr.rel (!%p19_p11) target bundleno = 5 (0x5), region = 100 }
 0x30e   :  { %1357 = vsyncpa [#allocation3], 1 }
 0x30f   :  { %1359 = vsyncpa [#allocation3 + $0x1], 1 }
 0x310   :  { %1360 = vsyncpa [#allocation4], 1 }
 0x311   :  { %1362 = vsyncpa [#allocation4 + $0x1], 1 }
 0x312   :  { %1363 = vsyncpa [#allocation6], 1 }

</bundles_post_ra>
